<compile_context>
chip_gen: v6e
topology: v6e:2x2x1
jax: 0.10.0
libtpu: 0.0.40
codegen_flags: <defaults>
</compile_context>

<pallas_src>
import jax
import jax.numpy as jnp
from jax.experimental import pallas as pl
from jax.experimental.pallas import tpu as pltpu

# ---------------- model hyper-params (small, synthetic) ----------------
BATCH = 2
SEQ = 8
D_MODEL = 128
N_HEAD = 4
HEAD_DIM = D_MODEL // N_HEAD
MLP_HIDDEN = 4 * D_MODEL
NUM_BLOCKS = 2
LN_EPS = 1e-5
NEG_INF = -1e30


def _layernorm(h, w, b):
    mu = jnp.mean(h, axis=-1, keepdims=True)
    var = jnp.mean((h - mu) ** 2, axis=-1, keepdims=True)
    return (h - mu) * jax.lax.rsqrt(var + LN_EPS) * w + b


def gpt_block_kernel(
    x_ref,                 # (T, C)   input activations for this batch element
    ln1w_ref, ln1b_ref,    # (1, C)   f32
    wqkv_ref, bqkv_ref,    # (C, 3C) bf16, (1, 3C) f32   (scale folded into Q cols)
    wo_ref, bo_ref,        # (C, C)  bf16, (1, C)  f32
    ln2w_ref, ln2b_ref,    # (1, C)   f32
    w1_ref, b1_ref,        # (C, 4C) bf16, (1, 4C) f32
    w2_ref, b2_ref,        # (4C, C) bf16, (1, C)  f32
    out_ref,               # (T, C)   output
    acc_ref,               # (T, C)   f32 VMEM scratch: resident activation slab
):
    blk = pl.program_id(1)
    T, C = SEQ, D_MODEL
    H, D = N_HEAD, HEAD_DIM

    @pl.when(blk == 0)
    def _():
        acc_ref[...] = x_ref[...]

    x = acc_ref[...]                                             # (T, C) f32

    # ---------------- attention sub-layer ----------------
    h1 = _layernorm(x, ln1w_ref[...], ln1b_ref[...])             # (T, C) f32
    proj = jnp.dot(h1.astype(jnp.bfloat16), wqkv_ref[...],
                   preferred_element_type=jnp.float32)
    proj = proj + bqkv_ref[...]                                  # (T, 3C) f32
    # lane-aligned C-wide (=128) slices, then split into heads
    q = proj[:, 0 * C:1 * C].reshape(T, H, D).transpose(1, 0, 2)  # (H, T, D)
    k = proj[:, 1 * C:2 * C].reshape(T, H, D).transpose(1, 0, 2)
    v = proj[:, 2 * C:3 * C].reshape(T, H, D).transpose(1, 0, 2)

    att = jnp.einsum('hqd,hkd->hqk', q.astype(jnp.bfloat16),
                     k.astype(jnp.bfloat16),
                     preferred_element_type=jnp.float32)          # (H, T, T)
    # in-kernel causal mask (per batch element -> no cross-batch scores)
    row = jax.lax.broadcasted_iota(jnp.int32, (T, T), 0)
    col = jax.lax.broadcasted_iota(jnp.int32, (T, T), 1)
    att = jnp.where((col <= row)[None, :, :], att, NEG_INF)
    att = att - jnp.max(att, axis=-1, keepdims=True)
    p = jnp.exp(att)
    p = p / jnp.sum(p, axis=-1, keepdims=True)                    # exact softmax

    ctx = jnp.einsum('hqk,hkd->hqd', p.astype(jnp.bfloat16),
                     v.astype(jnp.bfloat16),
                     preferred_element_type=jnp.float32)          # (H, T, D)
    ctx = ctx.transpose(1, 0, 2).reshape(T, C)                    # (T, C)
    y = jnp.dot(ctx.astype(jnp.bfloat16), wo_ref[...],
                preferred_element_type=jnp.float32) + bo_ref[...]
    x = x + y

    # ---------------- MLP sub-layer ----------------
    h2 = _layernorm(x, ln2w_ref[...], ln2b_ref[...])
    m = jnp.dot(h2.astype(jnp.bfloat16), w1_ref[...],
                preferred_element_type=jnp.float32) + b1_ref[...]
    # TODO(synk): torch.nn.GELU defaults to exact erf; tanh approx used here.
    m = jax.nn.gelu(m, approximate=True)
    x = x + jnp.dot(m.astype(jnp.bfloat16), w2_ref[...],
                    preferred_element_type=jnp.float32) + b2_ref[...]

    acc_ref[...] = x

    @pl.when(blk == pl.num_programs(1) - 1)
    def _():
        out_ref[...] = x.astype(out_ref.dtype)


def gpt_forward(x, params):
    """x: (B, T, C) float32 -> (B, T, C). One pallas_call, grid over (batch, blocks)."""
    B, T, C = x.shape
    NB = params[0].shape[0]

    def xmap(b, blk):
        return (b, 0, 0)

    def wmap(b, blk):
        return (blk, 0, 0)

    in_specs = [pl.BlockSpec((None, T, C), xmap)]
    for p in params:
        in_specs.append(pl.BlockSpec((None,) + p.shape[1:], wmap))

    return pl.pallas_call(
        gpt_block_kernel,
        out_shape=jax.ShapeDtypeStruct((B, T, C), x.dtype),
        grid=(B, NB),
        in_specs=in_specs,
        out_specs=pl.BlockSpec((None, T, C), xmap),
        scratch_shapes=[pltpu.VMEM((T, C), jnp.float32)],
        compiler_params=pltpu.CompilerParams(
            dimension_semantics=("parallel", "arbitrary")),
    )(x, *params)


def init_stacked_params(key, nb, C, hidden, n_head, head_dim):
    """Per-block torch.nn.Linear-style weights, stacked on a leading block axis.
    Matmul weights are bf16; LN params / biases stay f32. The softmax scale
    1/sqrt(head_dim) is folded into the Q weight columns (bias is zero)."""
    ks = jax.random.split(key, 6)
    std = 0.02
    scale = 1.0 / (head_dim ** 0.5)

    ln1w = jnp.ones((nb, 1, C), jnp.float32)
    ln1b = jnp.zeros((nb, 1, C), jnp.float32)

    wq = std * jax.random.normal(ks[0], (nb, C, C), jnp.float32) * scale
    wk = std * jax.random.normal(ks[1], (nb, C, C), jnp.float32)
    wv = std * jax.random.normal(ks[2], (nb, C, C), jnp.float32)
    wqkv = jnp.concatenate([wq, wk, wv], axis=-1).astype(jnp.bfloat16)  # (nb,C,3C)
    bqkv = jnp.zeros((nb, 1, 3 * C), jnp.float32)

    wo = (std * jax.random.normal(ks[3], (nb, C, C), jnp.float32)).astype(jnp.bfloat16)
    bo = jnp.zeros((nb, 1, C), jnp.float32)

    ln2w = jnp.ones((nb, 1, C), jnp.float32)
    ln2b = jnp.zeros((nb, 1, C), jnp.float32)

    w1 = (std * jax.random.normal(ks[4], (nb, C, hidden), jnp.float32)).astype(jnp.bfloat16)
    b1 = jnp.zeros((nb, 1, hidden), jnp.float32)
    w2 = (std * jax.random.normal(ks[5], (nb, hidden, C), jnp.float32)).astype(jnp.bfloat16)
    b2 = jnp.zeros((nb, 1, C), jnp.float32)
    return (ln1w, ln1b, wqkv, bqkv, wo, bo, ln2w, ln2b, w1, b1, w2, b2)


if __name__ == "__main__":
    key = jax.random.PRNGKey(0)
    k_x, k_p = jax.random.split(key)
    x = jax.random.normal(k_x, (BATCH, SEQ, D_MODEL), jnp.float32)
    params = init_stacked_params(k_p, NUM_BLOCKS, D_MODEL, MLP_HIDDEN,
                                 N_HEAD, HEAD_DIM)

    y = jax.jit(gpt_forward)(x, params)
    jax.block_until_ready(y)
    assert y.shape == (BATCH, SEQ, D_MODEL)
    assert bool(jnp.all(jnp.isfinite(y)))
    print("KERNEL_OK")
</pallas_src>

<mosaic_0001>
module attributes {stable_mosaic.version = 11 : i64} {
  func.func @gpt_block_kernel(%arg0: i32, %arg1: i32, %arg2: memref<1x8x128xf32, #tpu.memory_space<vmem>>, %arg3: memref<1x1x128xf32, #tpu.memory_space<vmem>>, %arg4: memref<1x1x128xf32, #tpu.memory_space<vmem>>, %arg5: memref<1x128x384xbf16, #tpu.memory_space<vmem>>, %arg6: memref<1x1x384xf32, #tpu.memory_space<vmem>>, %arg7: memref<1x128x128xbf16, #tpu.memory_space<vmem>>, %arg8: memref<1x1x128xf32, #tpu.memory_space<vmem>>, %arg9: memref<1x1x128xf32, #tpu.memory_space<vmem>>, %arg10: memref<1x1x128xf32, #tpu.memory_space<vmem>>, %arg11: memref<1x128x512xbf16, #tpu.memory_space<vmem>>, %arg12: memref<1x1x512xf32, #tpu.memory_space<vmem>>, %arg13: memref<1x512x128xbf16, #tpu.memory_space<vmem>>, %arg14: memref<1x1x128xf32, #tpu.memory_space<vmem>>, %arg15: memref<1x8x128xf32, #tpu.memory_space<vmem>>, %arg16: memref<8x128xf32, #tpu.memory_space<vmem>>) attributes {dimension_semantics = [#tpu.dimension_semantics<parallel>, #tpu.dimension_semantics<arbitrary>], iteration_bounds = array<i64: 2, 2>, scalar_prefetch = 0 : i64, scratch_operands = 1 : i64, tpu.core_type = #tpu.core_type<tc>, window_params = [{transform_indices = @transform_0, window_bounds = array<i64: 1, 8, 128>}, {transform_indices = @transform_1, window_bounds = array<i64: 1, 1, 128>}, {transform_indices = @transform_2, window_bounds = array<i64: 1, 1, 128>}, {transform_indices = @transform_3, window_bounds = array<i64: 1, 128, 384>}, {transform_indices = @transform_4, window_bounds = array<i64: 1, 1, 384>}, {transform_indices = @transform_5, window_bounds = array<i64: 1, 128, 128>}, {transform_indices = @transform_6, window_bounds = array<i64: 1, 1, 128>}, {transform_indices = @transform_7, window_bounds = array<i64: 1, 1, 128>}, {transform_indices = @transform_8, window_bounds = array<i64: 1, 1, 128>}, {transform_indices = @transform_9, window_bounds = array<i64: 1, 128, 512>}, {transform_indices = @transform_10, window_bounds = array<i64: 1, 1, 512>}, {transform_indices = @transform_11, window_bounds = array<i64: 1, 512, 128>}, {transform_indices = @transform_12, window_bounds = array<i64: 1, 1, 128>}, {transform_indices = @transform_13, window_bounds = array<i64: 1, 8, 128>}]} {
    %c0_i32 = arith.constant 0 : i32
    %0 = arith.cmpi eq, %arg1, %c0_i32 : i32
    %1 = arith.extui %0 : i1 to i32
    %c0_i32_0 = arith.constant 0 : i32
    %2 = arith.cmpi ne, %1, %c0_i32_0 : i32
    scf.if %2 {
      %c0_63 = arith.constant 0 : index
      %c0_64 = arith.constant 0 : index
      %c0_65 = arith.constant 0 : index
      %141 = vector.load %arg2[%c0_63, %c0_64, %c0_65] : memref<1x8x128xf32, #tpu.memory_space<vmem>>, vector<1x8x128xf32>
      %142 = vector.shape_cast %141 : vector<1x8x128xf32> to vector<8x128xf32>
      %c0_66 = arith.constant 0 : index
      %c0_67 = arith.constant 0 : index
      %143 = vector.load %arg16[%c0_66, %c0_67] : memref<8x128xf32, #tpu.memory_space<vmem>>, vector<8x128xf32>
      tpu.vector_store %arg16[%c0_66, %c0_67], %142 {strides = array<i32>} : memref<8x128xf32, #tpu.memory_space<vmem>>, vector<8x128xf32>,
    } else {
    }
    %c0 = arith.constant 0 : index
    %c0_1 = arith.constant 0 : index
    %3 = vector.load %arg16[%c0, %c0_1] : memref<8x128xf32, #tpu.memory_space<vmem>>, vector<8x128xf32>
    %c0_2 = arith.constant 0 : index
    %c0_3 = arith.constant 0 : index
    %c0_4 = arith.constant 0 : index
    %4 = vector.load %arg3[%c0_2, %c0_3, %c0_4] : memref<1x1x128xf32, #tpu.memory_space<vmem>>, vector<1x1x128xf32>
    %5 = vector.shape_cast %4 : vector<1x1x128xf32> to vector<1x128xf32>
    %c0_5 = arith.constant 0 : index
    %c0_6 = arith.constant 0 : index
    %c0_7 = arith.constant 0 : index
    %6 = vector.load %arg4[%c0_5, %c0_6, %c0_7] : memref<1x1x128xf32, #tpu.memory_space<vmem>>, vector<1x1x128xf32>
    %7 = vector.shape_cast %6 : vector<1x1x128xf32> to vector<1x128xf32>
    %cst = arith.constant dense<0.000000e+00> : vector<8xf32>
    %8 = vector.multi_reduction <add>, %3, %cst [1] : vector<8x128xf32> to vector<8xf32>
    %9 = vector.shape_cast %8 : vector<8xf32> to vector<8x1xf32>
    %cst_8 = arith.constant 1.280000e+02 : f32
    %10 = vector.broadcast %cst_8 : f32 to vector<8x1xf32>
    %11 = arith.divf %9, %10 : vector<8x1xf32>
    %12 = vector.broadcast %11 : vector<8x1xf32> to vector<8x128xf32>
    %13 = arith.subf %3, %12 : vector<8x128xf32>
    %14 = arith.mulf %13, %13 : vector<8x128xf32>
    %cst_9 = arith.constant dense<0.000000e+00> : vector<8xf32>
    %15 = vector.multi_reduction <add>, %14, %cst_9 [1] : vector<8x128xf32> to vector<8xf32>
    %16 = vector.shape_cast %15 : vector<8xf32> to vector<8x1xf32>
    %cst_10 = arith.constant 1.280000e+02 : f32
    %17 = vector.broadcast %cst_10 : f32 to vector<8x1xf32>
    %18 = arith.divf %16, %17 : vector<8x1xf32>
    %19 = vector.broadcast %11 : vector<8x1xf32> to vector<8x128xf32>
    %20 = arith.subf %3, %19 : vector<8x128xf32>
    %cst_11 = arith.constant 9.99999974E-6 : f32
    %21 = vector.broadcast %cst_11 : f32 to vector<8x1xf32>
    %22 = arith.addf %18, %21 : vector<8x1xf32>
    %23 = math.rsqrt %22 : vector<8x1xf32>
    %24 = vector.broadcast %23 : vector<8x1xf32> to vector<8x128xf32>
    %25 = arith.mulf %20, %24 : vector<8x128xf32>
    %26 = vector.broadcast %5 : vector<1x128xf32> to vector<8x128xf32>
    %27 = arith.mulf %25, %26 : vector<8x128xf32>
    %28 = vector.broadcast %7 : vector<1x128xf32> to vector<8x128xf32>
    %29 = arith.addf %27, %28 : vector<8x128xf32>
    %30 = arith.truncf %29 : vector<8x128xf32> to vector<8x128xbf16>
    %c0_12 = arith.constant 0 : index
    %c0_13 = arith.constant 0 : index
    %c0_14 = arith.constant 0 : index
    %31 = vector.load %arg5[%c0_12, %c0_13, %c0_14] : memref<1x128x384xbf16, #tpu.memory_space<vmem>>, vector<1x128x384xbf16>
    %32 = vector.shape_cast %31 : vector<1x128x384xbf16> to vector<128x384xbf16>
    %cst_15 = arith.constant dense<0.000000e+00> : vector<8x384xf32>
    %33 = tpu.matmul %30, %32, %cst_15 {dimension_numbers = #tpu.dot_dimension_numbers<[1], [0], [0], [1], [0, 0, 1, 1], [], []>} : vector<8x128xbf16>, vector<128x384xbf16>, vector<8x384xf32> -> vector<8x384xf32>
    %c0_16 = arith.constant 0 : index
    %c0_17 = arith.constant 0 : index
    %c0_18 = arith.constant 0 : index
    %34 = vector.load %arg6[%c0_16, %c0_17, %c0_18] : memref<1x1x384xf32, #tpu.memory_space<vmem>>, vector<1x1x384xf32>
    %35 = vector.shape_cast %34 : vector<1x1x384xf32> to vector<1x384xf32>
    %36 = vector.broadcast %35 : vector<1x384xf32> to vector<8x384xf32>
    %37 = arith.addf %33, %36 : vector<8x384xf32>
    %38 = vector.extract_strided_slice %37 {offsets = [0, 0], sizes = [8, 128], strides = [1, 1]} : vector<8x384xf32> to vector<8x128xf32>
    %39 = vector.shape_cast %38 : vector<8x128xf32> to vector<8x4x32xf32>
    %40 = tpu.transpose %39, [1, 0, 2] : vector<8x4x32xf32> -> vector<4x8x32xf32>
    %41 = vector.extract_strided_slice %37 {offsets = [0, 128], sizes = [8, 128], strides = [1, 1]} : vector<8x384xf32> to vector<8x128xf32>
    %42 = vector.shape_cast %41 : vector<8x128xf32> to vector<8x4x32xf32>
    %43 = tpu.transpose %42, [1, 0, 2] : vector<8x4x32xf32> -> vector<4x8x32xf32>
    %44 = vector.extract_strided_slice %37 {offsets = [0, 256], sizes = [8, 128], strides = [1, 1]} : vector<8x384xf32> to vector<8x128xf32>
    %45 = vector.shape_cast %44 : vector<8x128xf32> to vector<8x4x32xf32>
    %46 = tpu.transpose %45, [1, 0, 2] : vector<8x4x32xf32> -> vector<4x8x32xf32>
    %47 = arith.truncf %40 : vector<4x8x32xf32> to vector<4x8x32xbf16>
    %48 = arith.truncf %43 : vector<4x8x32xf32> to vector<4x8x32xbf16>
    "tpu.trace_start"() <{level = 10 : i32, message = "hqd,hkd->hqk"}> : () -> ()
    %cst_19 = arith.constant dense<0.000000e+00> : vector<4x8x8xf32>
    %49 = tpu.matmul %47, %48, %cst_19 {dimension_numbers = #tpu.dot_dimension_numbers<[2], [2], [1], [1], [0, 0, 0, 1, 1, 1], [0], [0]>} : vector<4x8x32xbf16>, vector<4x8x32xbf16>, vector<4x8x8xf32> -> vector<4x8x8xf32>
    "tpu.trace_stop"() : () -> ()
    %50 = tpu.iota {dimensions = array<i32: 0>} : vector<8x8xi32>
    %51 = tpu.iota {dimensions = array<i32: 1>} : vector<8x8xi32>
    %52 = arith.cmpi sle, %51, %50 : vector<8x8xi32>
    %53 = vector.shape_cast %52 : vector<8x8xi1> to vector<1x8x8xi1>
    %cst_20 = arith.constant -1.000000e+30 : f32
    %54 = vector.shape_cast %53 : vector<1x8x8xi1> to vector<1x8x8xi1>
    %55 = vector.broadcast %54 : vector<1x8x8xi1> to vector<4x8x8xi1>
    %56 = vector.broadcast %cst_20 : f32 to vector<4x8x8xf32>
    %57 = arith.select %55, %49, %56 : vector<4x8x8xi1>, vector<4x8x8xf32>
    %cst_21 = arith.constant dense<0xFF800000> : vector<4x8xf32>
    %58 = vector.multi_reduction <maximumf>, %57, %cst_21 [2] : vector<4x8x8xf32> to vector<4x8xf32>
    %59 = vector.shape_cast %58 : vector<4x8xf32> to vector<4x8x1xf32>
    %60 = vector.broadcast %59 : vector<4x8x1xf32> to vector<4x8x8xf32>
    %61 = arith.subf %57, %60 : vector<4x8x8xf32>
    %62 = math.exp %61 : vector<4x8x8xf32>
    %cst_22 = arith.constant dense<0.000000e+00> : vector<4x8xf32>
    %63 = vector.multi_reduction <add>, %62, %cst_22 [2] : vector<4x8x8xf32> to vector<4x8xf32>
    %64 = vector.shape_cast %63 : vector<4x8xf32> to vector<4x8x1xf32>
    %65 = vector.broadcast %64 : vector<4x8x1xf32> to vector<4x8x8xf32>
    %66 = arith.divf %62, %65 : vector<4x8x8xf32>
    %67 = arith.truncf %66 : vector<4x8x8xf32> to vector<4x8x8xbf16>
    %68 = arith.truncf %46 : vector<4x8x32xf32> to vector<4x8x32xbf16>
    "tpu.trace_start"() <{level = 10 : i32, message = "hqk,hkd->hqd"}> : () -> ()
    %cst_23 = arith.constant dense<0.000000e+00> : vector<4x8x32xf32>
    %69 = tpu.matmul %67, %68, %cst_23 {dimension_numbers = #tpu.dot_dimension_numbers<[2], [1], [1], [2], [0, 0, 0, 1, 1, 2], [0], [0]>} : vector<4x8x8xbf16>, vector<4x8x32xbf16>, vector<4x8x32xf32> -> vector<4x8x32xf32>
    "tpu.trace_stop"() : () -> ()
    %70 = tpu.transpose %69, [1, 0, 2] : vector<4x8x32xf32> -> vector<8x4x32xf32>
    %71 = vector.shape_cast %70 : vector<8x4x32xf32> to vector<8x128xf32>
    %72 = arith.truncf %71 : vector<8x128xf32> to vector<8x128xbf16>
    %c0_24 = arith.constant 0 : index
    %c0_25 = arith.constant 0 : index
    %c0_26 = arith.constant 0 : index
    %73 = vector.load %arg7[%c0_24, %c0_25, %c0_26] : memref<1x128x128xbf16, #tpu.memory_space<vmem>>, vector<1x128x128xbf16>
    %74 = vector.shape_cast %73 : vector<1x128x128xbf16> to vector<128x128xbf16>
    %cst_27 = arith.constant dense<0.000000e+00> : vector<8x128xf32>
    %75 = tpu.matmul %72, %74, %cst_27 {dimension_numbers = #tpu.dot_dimension_numbers<[1], [0], [0], [1], [0, 0, 1, 1], [], []>} : vector<8x128xbf16>, vector<128x128xbf16>, vector<8x128xf32> -> vector<8x128xf32>
    %c0_28 = arith.constant 0 : index
    %c0_29 = arith.constant 0 : index
    %c0_30 = arith.constant 0 : index
    %76 = vector.load %arg8[%c0_28, %c0_29, %c0_30] : memref<1x1x128xf32, #tpu.memory_space<vmem>>, vector<1x1x128xf32>
    %77 = vector.shape_cast %76 : vector<1x1x128xf32> to vector<1x128xf32>
    %78 = vector.broadcast %77 : vector<1x128xf32> to vector<8x128xf32>
    %79 = arith.addf %75, %78 : vector<8x128xf32>
    %80 = arith.addf %3, %79 : vector<8x128xf32>
    %c0_31 = arith.constant 0 : index
    %c0_32 = arith.constant 0 : index
    %c0_33 = arith.constant 0 : index
    %81 = vector.load %arg9[%c0_31, %c0_32, %c0_33] : memref<1x1x128xf32, #tpu.memory_space<vmem>>, vector<1x1x128xf32>
    %82 = vector.shape_cast %81 : vector<1x1x128xf32> to vector<1x128xf32>
    %c0_34 = arith.constant 0 : index
    %c0_35 = arith.constant 0 : index
    %c0_36 = arith.constant 0 : index
    %83 = vector.load %arg10[%c0_34, %c0_35, %c0_36] : memref<1x1x128xf32, #tpu.memory_space<vmem>>, vector<1x1x128xf32>
    %84 = vector.shape_cast %83 : vector<1x1x128xf32> to vector<1x128xf32>
    %cst_37 = arith.constant dense<0.000000e+00> : vector<8xf32>
    %85 = vector.multi_reduction <add>, %80, %cst_37 [1] : vector<8x128xf32> to vector<8xf32>
    %86 = vector.shape_cast %85 : vector<8xf32> to vector<8x1xf32>
    %cst_38 = arith.constant 1.280000e+02 : f32
    %87 = vector.broadcast %cst_38 : f32 to vector<8x1xf32>
    %88 = arith.divf %86, %87 : vector<8x1xf32>
    %89 = vector.broadcast %88 : vector<8x1xf32> to vector<8x128xf32>
    %90 = arith.subf %80, %89 : vector<8x128xf32>
    %91 = arith.mulf %90, %90 : vector<8x128xf32>
    %cst_39 = arith.constant dense<0.000000e+00> : vector<8xf32>
    %92 = vector.multi_reduction <add>, %91, %cst_39 [1] : vector<8x128xf32> to vector<8xf32>
    %93 = vector.shape_cast %92 : vector<8xf32> to vector<8x1xf32>
    %cst_40 = arith.constant 1.280000e+02 : f32
    %94 = vector.broadcast %cst_40 : f32 to vector<8x1xf32>
    %95 = arith.divf %93, %94 : vector<8x1xf32>
    %96 = vector.broadcast %88 : vector<8x1xf32> to vector<8x128xf32>
    %97 = arith.subf %80, %96 : vector<8x128xf32>
    %cst_41 = arith.constant 9.99999974E-6 : f32
    %98 = vector.broadcast %cst_41 : f32 to vector<8x1xf32>
    %99 = arith.addf %95, %98 : vector<8x1xf32>
    %100 = math.rsqrt %99 : vector<8x1xf32>
    %101 = vector.broadcast %100 : vector<8x1xf32> to vector<8x128xf32>
    %102 = arith.mulf %97, %101 : vector<8x128xf32>
    %103 = vector.broadcast %82 : vector<1x128xf32> to vector<8x128xf32>
    %104 = arith.mulf %102, %103 : vector<8x128xf32>
    %105 = vector.broadcast %84 : vector<1x128xf32> to vector<8x128xf32>
    %106 = arith.addf %104, %105 : vector<8x128xf32>
    %107 = arith.truncf %106 : vector<8x128xf32> to vector<8x128xbf16>
    %c0_42 = arith.constant 0 : index
    %c0_43 = arith.constant 0 : index
    %c0_44 = arith.constant 0 : index
    %108 = vector.load %arg11[%c0_42, %c0_43, %c0_44] : memref<1x128x512xbf16, #tpu.memory_space<vmem>>, vector<1x128x512xbf16>
    %109 = vector.shape_cast %108 : vector<1x128x512xbf16> to vector<128x512xbf16>
    %cst_45 = arith.constant dense<0.000000e+00> : vector<8x512xf32>
    %110 = tpu.matmul %107, %109, %cst_45 {dimension_numbers = #tpu.dot_dimension_numbers<[1], [0], [0], [1], [0, 0, 1, 1], [], []>} : vector<8x128xbf16>, vector<128x512xbf16>, vector<8x512xf32> -> vector<8x512xf32>
    %c0_46 = arith.constant 0 : index
    %c0_47 = arith.constant 0 : index
    %c0_48 = arith.constant 0 : index
    %111 = vector.load %arg12[%c0_46, %c0_47, %c0_48] : memref<1x1x512xf32, #tpu.memory_space<vmem>>, vector<1x1x512xf32>
    %112 = vector.shape_cast %111 : vector<1x1x512xf32> to vector<1x512xf32>
    %113 = vector.broadcast %112 : vector<1x512xf32> to vector<8x512xf32>
    %114 = arith.addf %110, %113 : vector<8x512xf32>
    %115 = arith.mulf %114, %114 : vector<8x512xf32>
    %116 = arith.mulf %114, %115 : vector<8x512xf32>
    %cst_49 = arith.constant 4.471500e-02 : f32
    %117 = vector.broadcast %cst_49 : f32 to vector<8x512xf32>
    %118 = arith.mulf %117, %116 : vector<8x512xf32>
    %119 = arith.addf %114, %118 : vector<8x512xf32>
    %cst_50 = arith.constant 0.797884583 : f32
    %120 = vector.broadcast %cst_50 : f32 to vector<8x512xf32>
    %121 = arith.mulf %120, %119 : vector<8x512xf32>
    %122 = math.tanh %121 : vector<8x512xf32>
    %cst_51 = arith.constant 1.000000e+00 : f32
    %123 = vector.broadcast %cst_51 : f32 to vector<8x512xf32>
    %124 = arith.addf %123, %122 : vector<8x512xf32>
    %cst_52 = arith.constant 5.000000e-01 : f32
    %125 = vector.broadcast %cst_52 : f32 to vector<8x512xf32>
    %126 = arith.mulf %125, %124 : vector<8x512xf32>
    %127 = arith.mulf %114, %126 : vector<8x512xf32>
    %128 = arith.truncf %127 : vector<8x512xf32> to vector<8x512xbf16>
    %c0_53 = arith.constant 0 : index
    %c0_54 = arith.constant 0 : index
    %c0_55 = arith.constant 0 : index
    %129 = vector.load %arg13[%c0_53, %c0_54, %c0_55] : memref<1x512x128xbf16, #tpu.memory_space<vmem>>, vector<1x512x128xbf16>
    %130 = vector.shape_cast %129 : vector<1x512x128xbf16> to vector<512x128xbf16>
    %cst_56 = arith.constant dense<0.000000e+00> : vector<8x128xf32>
    %131 = tpu.matmul %128, %130, %cst_56 {dimension_numbers = #tpu.dot_dimension_numbers<[1], [0], [0], [1], [0, 0, 1, 1], [], []>} : vector<8x512xbf16>, vector<512x128xbf16>, vector<8x128xf32> -> vector<8x128xf32>
    %132 = arith.addf %80, %131 : vector<8x128xf32>
    %c0_57 = arith.constant 0 : index
    %c0_58 = arith.constant 0 : index
    %c0_59 = arith.constant 0 : index
    %133 = vector.load %arg14[%c0_57, %c0_58, %c0_59] : memref<1x1x128xf32, #tpu.memory_space<vmem>>, vector<1x1x128xf32>
    %134 = vector.shape_cast %133 : vector<1x1x128xf32> to vector<1x128xf32>
    %135 = vector.broadcast %134 : vector<1x128xf32> to vector<8x128xf32>
    %136 = arith.addf %132, %135 : vector<8x128xf32>
    %c0_60 = arith.constant 0 : index
    %c0_61 = arith.constant 0 : index
    %137 = vector.load %arg16[%c0_60, %c0_61] : memref<8x128xf32, #tpu.memory_space<vmem>>, vector<8x128xf32>
    tpu.vector_store %arg16[%c0_60, %c0_61], %136 {strides = array<i32>} : memref<8x128xf32, #tpu.memory_space<vmem>>, vector<8x128xf32>,
    %c1_i32 = arith.constant 1 : i32
    %138 = arith.cmpi eq, %arg1, %c1_i32 : i32
    %139 = arith.extui %138 : i1 to i32
    %c0_i32_62 = arith.constant 0 : i32
    %140 = arith.cmpi ne, %139, %c0_i32_62 : i32
    scf.if %140 {
      %c0_63 = arith.constant 0 : index
      %c0_64 = arith.constant 0 : index
      %c0_65 = arith.constant 0 : index
      %141 = vector.load %arg15[%c0_63, %c0_64, %c0_65] : memref<1x8x128xf32, #tpu.memory_space<vmem>>, vector<1x8x128xf32>
      %142 = vector.shape_cast %141 : vector<1x8x128xf32> to vector<8x128xf32>
      %143 = vector.shape_cast %136 : vector<8x128xf32> to vector<1x8x128xf32>
      tpu.vector_store %arg15[%c0_63, %c0_64, %c0_65], %143 {strides = array<i32>} : memref<1x8x128xf32, #tpu.memory_space<vmem>>, vector<1x8x128xf32>,
    } else {
    }
    return
  }
  func.func @transform_0(%arg0: i32, %arg1: i32) -> (i32, i32, i32) {
    %c0_i32 = arith.constant 0 : i32
    %c0_i32_0 = arith.constant 0 : i32
    %c0_i32_1 = arith.constant 0 : i32
    return %arg0, %c0_i32, %c0_i32_0 : i32, i32, i32
  }
  func.func @transform_1(%arg0: i32, %arg1: i32) -> (i32, i32, i32) {
    %c0_i32 = arith.constant 0 : i32
    %c0_i32_0 = arith.constant 0 : i32
    %c0_i32_1 = arith.constant 0 : i32
    return %arg1, %c0_i32, %c0_i32_0 : i32, i32, i32
  }
  func.func @transform_2(%arg0: i32, %arg1: i32) -> (i32, i32, i32) {
    %c0_i32 = arith.constant 0 : i32
    %c0_i32_0 = arith.constant 0 : i32
    %c0_i32_1 = arith.constant 0 : i32
    return %arg1, %c0_i32, %c0_i32_0 : i32, i32, i32
  }
  func.func @transform_3(%arg0: i32, %arg1: i32) -> (i32, i32, i32) {
    %c0_i32 = arith.constant 0 : i32
    %c0_i32_0 = arith.constant 0 : i32
    %c0_i32_1 = arith.constant 0 : i32
    return %arg1, %c0_i32, %c0_i32_0 : i32, i32, i32
  }
  func.func @transform_4(%arg0: i32, %arg1: i32) -> (i32, i32, i32) {
    %c0_i32 = arith.constant 0 : i32
    %c0_i32_0 = arith.constant 0 : i32
    %c0_i32_1 = arith.constant 0 : i32
    return %arg1, %c0_i32, %c0_i32_0 : i32, i32, i32
  }
  func.func @transform_5(%arg0: i32, %arg1: i32) -> (i32, i32, i32) {
    %c0_i32 = arith.constant 0 : i32
    %c0_i32_0 = arith.constant 0 : i32
    %c0_i32_1 = arith.constant 0 : i32
    return %arg1, %c0_i32, %c0_i32_0 : i32, i32, i32
  }
  func.func @transform_6(%arg0: i32, %arg1: i32) -> (i32, i32, i32) {
    %c0_i32 = arith.constant 0 : i32
    %c0_i32_0 = arith.constant 0 : i32
    %c0_i32_1 = arith.constant 0 : i32
    return %arg1, %c0_i32, %c0_i32_0 : i32, i32, i32
  }
  func.func @transform_7(%arg0: i32, %arg1: i32) -> (i32, i32, i32) {
    %c0_i32 = arith.constant 0 : i32
    %c0_i32_0 = arith.constant 0 : i32
    %c0_i32_1 = arith.constant 0 : i32
    return %arg1, %c0_i32, %c0_i32_0 : i32, i32, i32
  }
  func.func @transform_8(%arg0: i32, %arg1: i32) -> (i32, i32, i32) {
    %c0_i32 = arith.constant 0 : i32
    %c0_i32_0 = arith.constant 0 : i32
    %c0_i32_1 = arith.constant 0 : i32
    return %arg1, %c0_i32, %c0_i32_0 : i32, i32, i32
  }
  func.func @transform_9(%arg0: i32, %arg1: i32) -> (i32, i32, i32) {
    %c0_i32 = arith.constant 0 : i32
    %c0_i32_0 = arith.constant 0 : i32
    %c0_i32_1 = arith.constant 0 : i32
    return %arg1, %c0_i32, %c0_i32_0 : i32, i32, i32
  }
  func.func @transform_10(%arg0: i32, %arg1: i32) -> (i32, i32, i32) {
    %c0_i32 = arith.constant 0 : i32
    %c0_i32_0 = arith.constant 0 : i32
    %c0_i32_1 = arith.constant 0 : i32
    return %arg1, %c0_i32, %c0_i32_0 : i32, i32, i32
  }
  func.func @transform_11(%arg0: i32, %arg1: i32) -> (i32, i32, i32) {
    %c0_i32 = arith.constant 0 : i32
    %c0_i32_0 = arith.constant 0 : i32
    %c0_i32_1 = arith.constant 0 : i32
    return %arg1, %c0_i32, %c0_i32_0 : i32, i32, i32
  }
  func.func @transform_12(%arg0: i32, %arg1: i32) -> (i32, i32, i32) {
    %c0_i32 = arith.constant 0 : i32
    %c0_i32_0 = arith.constant 0 : i32
    %c0_i32_1 = arith.constant 0 : i32
    return %arg1, %c0_i32, %c0_i32_0 : i32, i32, i32
  }
  func.func @transform_13(%arg0: i32, %arg1: i32) -> (i32, i32, i32) {
    %c0_i32 = arith.constant 0 : i32
    %c0_i32_0 = arith.constant 0 : i32
    %c0_i32_1 = arith.constant 0 : i32
    return %arg0, %c0_i32, %c0_i32_0 : i32, i32, i32
  }
}

</mosaic_0001>

<bundles_post_ra>
// kernel: gpt_forward.1
= control target key start
LH: loop header
LB: loop body
LE: loop exit
PB: predicated region body
PF: predicated region fallthrough
CT: control target
= control target key end

     0   :  { %s5134_s0 = inlined_call_operand.hbm [shape: f32[2,8,128], index: 0, kind: input, shape index: {}]   ;;  %s5135_s1 = inlined_call_operand.hbm [shape: f32[2,1,128], index: 1, kind: input, shape index: {}]   ;;  %s5136_s2 = inlined_call_operand.hbm [shape: f32[2,1,128], index: 2, kind: input, shape index: {}]   ;;  %s5137_s3 = inlined_call_operand.hbm [shape: bf16[2,128,384], index: 3, kind: input, shape index: {}]   ;;  %s5138_s4 = inlined_call_operand.vmem [shape: f32[2,1,384], index: 4, kind: input, shape index: {}]   ;;  %s5139_s5 = inlined_call_operand.hbm [shape: bf16[2,128,128], index: 5, kind: input, shape index: {}]   ;;  %s5140_s6 = inlined_call_operand.vmem [shape: f32[2,1,128], index: 6, kind: input, shape index: {}]   ;;  %s5141_s7 = inlined_call_operand.hbm [shape: f32[2,1,128], index: 7, kind: input, shape index: {}]   ;;  %s5142_s8 = inlined_call_operand.hbm [shape: f32[2,1,128], index: 8, kind: input, shape index: {}]   ;;  %s5143_s9 = inlined_call_operand.hbm [shape: bf16[2,128,512], index: 9, kind: input, shape index: {}]   ;;  %s5144_s10 = inlined_call_operand.vmem [shape: f32[2,1,512], index: 10, kind: input, shape index: {}]   ;;  %s5145_s11 = inlined_call_operand.hbm [shape: bf16[2,512,128], index: 11, kind: input, shape index: {}]   ;;  %s5146_s12 = inlined_call_operand.vmem [shape: f32[2,1,128], index: 12, kind: input, shape index: {}]   ;;  %s5147_s13 = inlined_call_operand.hbm [shape: f32[2,8,128], index: 13, kind: output, shape index: {}]  }
   0x1   :  { %5171 = sst [smem:[#allocation40_spill]] %s5134_s0 }
   0x2   :  { %5172 = sst [smem:[#allocation41_spill]] %s5135_s1 }
   0x3   :  { %5173 = sst [smem:[#allocation42_spill]] %s5136_s2 }
   0x4   :  { %5174 = sst [smem:[#allocation43_spill]] %s5137_s3 }
   0x5   :  { %5175 = sst [smem:[#allocation44_spill]] %s5138_s4 }
   0x6   :  { %5176 = sst [smem:[#allocation45_spill]] %s5139_s5 }
   0x7   :  { %5177 = sst [smem:[#allocation46_spill]] %s5140_s6 }
   0x8   :  { %5178 = sst [smem:[#allocation47_spill]] %s5141_s7 }
   0x9   :  { %5179 = sst [smem:[#allocation48_spill]] %s5142_s8 }
   0xa   :  { %5180 = sst [smem:[#allocation49_spill]] %s5143_s9 }
   0xb   :  { %5181 = sst [smem:[#allocation50_spill]] %s5144_s10 }
   0xc   :  { %5182 = sst [smem:[#allocation51_spill]] %s5145_s11 }
   0xd   :  { %5183 = sst [smem:[#allocation52_spill]] %s5146_s12 }
   0xe   :  { %5184 = sst [smem:[#allocation53_spill]] %s5147_s13 }
   0xf   :  { %18 = vsyncpa [#allocation4], 0 }
  0x10   :  { %20 = vsyncpa [#allocation4 + $0x1], 0 }
  0x11   :  { %21 = vsyncpa [#allocation7], 0 }
  0x12   :  { %23 = vsyncpa [#allocation7 + $0x1], 0 }
  0x13   :  { %24 = vsyncpa [#allocation10], 0 }
  0x14   :  { %26 = vsyncpa [#allocation10 + $0x1], 0 }
  0x15   :  { %27 = vsyncpa [#allocation13], 0 }
  0x16   :  { %29 = vsyncpa [#allocation13 + $0x1], 0 }
  0x17   :  { %30 = vsyncpa [#allocation16], 0 }
  0x18   :  { %32 = vsyncpa [#allocation16 + $0x1], 0 }
  0x19   :  { %33 = vsyncpa [#allocation5], 0 }
  0x1a   :  { %35 = vsyncpa [#allocation5 + $0x1], 0  ;;  %s4380_s25 = smov 0   ;;  %s4382_s26 = smov 0  }
  0x1b   :  { %s4384_s27 = smov 0   ;;  %s4386_s28 = smov 0  }
  0x1c   :  { %s4388_s29 = smov 0   ;;  %s4390_s30 = smov 0  }
  0x1d   :  { %s4392_s14 = smov 0   ;;  %s4394_s15 = smov 0  }
  0x1e   :  { %s4396_s16 = smov 0   ;;  %s4398_s17 = smov 0  }
  0x1f   :  { %s4400_s18 = smov 0  }
  0x20 LB: > { %5185 = sst [smem:[#allocation25_spill]] %s4248_s26  ;;  %p68_p0 = scmp.eq.s32.totalorder %s4284_s18, 0  ;;  %s4284_s18 = sphi %s4400_s18, %s41_s18   ;;  %s4280_s17 = sphi %s4398_s17, %s5257_s17   ;;  %s4276_s16 = sphi %s4396_s16, %s5256_s16   ;;  %s4272_s15 = sphi %s4394_s15, %s5255_s15   ;;  %s4268_s14 = sphi %s4392_s14, %s5254_s14   ;;  %s4264_s30 = sphi %s4390_s30, %s5253_s30   ;;  %s4260_s29 = sphi %s4388_s29, %s5252_s29   ;;  %s4256_s28 = sphi %s4386_s28, %s5251_s28   ;;  %s4252_s27 = sphi %s4384_s27, %s5250_s27   ;;  %s4248_s26 = sphi %s4382_s26, %s5249_s26   ;;  %s4244_s25 = sphi %s4380_s25, %s5248_s25  }
  0x21   : > { %5186 = sst [smem:[#allocation26_spill]] %s4252_s27  ;;  %p93_p1 = scmp.ne.s32.totalorder %s4252_s27, %s4248_s26 }
  0x22   : > { %5187 = sst [smem:[#allocation27_spill]] %s4256_s28  ;;  %p5156_p2 = scmp.lt.s32.totalorder %s4284_s18, 4 }
  0x23   : > { %5188 = sst [smem:[#allocation28_spill]] %s4260_s29  ;;  %s4440_s19 = sand.u32 1, %s4284_s18  }
  0x24   : > { %5189 = sst [smem:[#allocation29_spill]] %s4264_s30  ;;  %p95_p3 = por %p93_p1, %p68_p0 }
  0x25   : > { %5190 = sst [smem:[#allocation30_spill]] %s4268_s14  ;;  %s4445_s20 = sand.u32 1, %s4252_s27  }
  0x26   : > { %5191 = sst [smem:[#allocation31_spill]] %s4272_s15  ;;  %s4448_s21 = sshll.u32 %s4276_s16, 4 }
  0x27   : > { %5192 = sst [smem:[#allocation32_spill]] %s4276_s16  ;;  %s456_s13 = scalar_lea.vmem [#allocation6], %s4445_s20 }
  0x28   : > { %5193 = sst [smem:[#allocation33_spill]] %s4280_s17  ;;  %s463_s15 = sshll.u32 %s456_s13, 4  ;;  %s464_s15 = int_to_ptr.vmem [resolvable:$true] %s463_s15 }
  0x29   : > { %s5194_s1 = sld [smem:[#allocation41_spill]]  ;;  %p4457_p4 = pnand %p5156_p2, %p95_p3 }
  0x2a   : > { %p3287_p5 = scmp.ge.s32.totalorder %s4284_s18, 1  ;;  %p629_p6 = scmp.lt.s32.totalorder %s4284_s18, 5 }
  0x2b   : > { %s5151_s4 = scalar_lea.sflag [#allocation7], %s4440_s19  ;;  %p4466_p7 = pneg %p4457_p4 }
  0x2c   : > { %s3909_s22 = scalar_lea.vmem %s464_s15, 16  ;;  %s4286_s13 = smov [#allocation6]  }
  0x2d   : > { %p3910_p8 = scmp.ne.s32.totalorder %s464_s15, %s3909_s22  ;;  %s3914_s23 = sshll.u32 %s4286_s13, 4  ;;  %s3915_s23 = int_to_ptr.vmem [resolvable:$false] %s3914_s23 }
  0x2e   : > { %p3917_p11 = scmp.lt.s32.totalorder %s464_s15, %s3915_s23 }
  0x2f   : > { %s461_s24 = scalar_lea.hbm %s5194_s1, %s4448_s21  ;;  %p3912_p9 = pnand %p3910_p8, %p4466_p7 }
  0x30   : > { %s3916_s1 = scalar_lea.vmem %s3915_s23, 32 }
  0x31   : > { %p3913_p10 = pneg %p3912_p9  ;;  %p3918_p12 = scmp.lt.s32.totalorder %s3916_s1, %s3909_s22 }
  0x33   : > { %p3919_p13 = por %p3918_p12, %p3917_p11 }
  0x35   : > { %p3920_p1 = pnand %p3919_p13, %p3913_p10 }
  0x37   : > { %3923 = shalt.err (!%p3920_p1)
}
  0x38   : > { %3617 = dma.hbm_to_vmem [thread:$0]  (!%p4457_p4), %s461_s24, 16, %s464_s15, %s5151_s4  }
  0x39   : > { %p4480_p3 = pnand %p3287_p5, %p629_p6  ;;  %s3587_s1 = smul.u32 192, %s4445_s20 }
  0x3a   : > { %s3588_s22 = smul.u32 3072, %s4276_s16  ;;  %s5199_s3 = sld [smem:[#allocation43_spill]] }
  0x3b   : > { %s5197_s13 = scalar_select %p4480_p3, 1, 0 }
  0x3c   : > { %s491_s8 = scalar_lea.vmem [#allocation9], %s3587_s1  ;;  %s5154_s2 = scalar_lea.sflag [#allocation10], %s4440_s19 }
  0x3d   : > { %5198 = sst [smem:[#allocation34_spill]] %s5197_s13  ;;  %s498_s5 = sshll.u32 %s491_s8, 4  ;;  %s499_s5 = int_to_ptr.vmem [resolvable:$true] %s498_s5 }
  0x3e   : > { %s3937_s0 = scalar_lea.vmem %s499_s5, 3072  ;;  %s4287_s15 = smov [#allocation9]  }
  0x3f   : > { %p3938_p8 = scmp.ne.s32.totalorder %s499_s5, %s3937_s0  ;;  %s3942_s24 = sshll.u32 %s4287_s15, 4  ;;  %s3943_s24 = int_to_ptr.vmem [resolvable:$false] %s3942_s24 }
  0x40   : > { %s497_s14 = scalar_lea.hbm %s5199_s3, %s3588_s22  ;;  %s3944_s4 = scalar_lea.vmem %s3943_s24, 6144 }
  0x41   : > { %p3940_p9 = pnand %p3938_p8, %p4466_p7  ;;  %p3945_p5 = scmp.lt.s32.totalorder %s499_s5, %s3943_s24 }
  0x42   : > { %p3946_p6 = scmp.lt.s32.totalorder %s3944_s4, %s3937_s0 }
  0x43   : > { %p3941_p10 = pneg %p3940_p9 }
  0x44   : > { %p3947_p11 = por %p3946_p6, %p3945_p5 }
  0x46   : > { %p3948_p12 = pnand %p3947_p11, %p3941_p10 }
  0x48   : > { %3951 = shalt.err (!%p3948_p12)
}
  0x49   : > { %s4288_s6 = smov 192   ;;  %s4289_s8 = smov 12  }
  0x4a   : > { %3623 = dma.hbm_to_vmem [thread:$0]  (!%p4457_p4), %s497_s14, 3072, %s499_s5, %s5154_s2, %s4288_s6, %s4288_s6, %s4289_s8  }
  0x4b   : > { %s5200_s7 = sld [smem:[#allocation47_spill]]  ;;  %s545_s15 = scalar_lea.vmem [#allocation12], %s4445_s20 }
  0x4c   : > { %s552_s0 = sshll.u32 %s545_s15, 4  ;;  %s5155_s4 = scalar_lea.sflag [#allocation13], %s4440_s19  ;;  %s553_s0 = int_to_ptr.vmem [resolvable:$true] %s552_s0 }
  0x4d   : > { %s3965_s24 = scalar_lea.vmem %s553_s0, 16  ;;  %s4290_s3 = smov [#allocation12]  }
  0x4e   : > { %p3966_p13 = scmp.ne.s32.totalorder %s553_s0, %s3965_s24  ;;  %s3970_s13 = sshll.u32 %s4290_s3, 4  ;;  %s3971_s13 = int_to_ptr.vmem [resolvable:$false] %s3970_s13 }
  0x4f   : > { %s3972_s26 = scalar_lea.vmem %s3971_s13, 32  ;;  %p3973_p9 = scmp.lt.s32.totalorder %s553_s0, %s3971_s13 }
  0x50   : > { %p3968_p1 = pnand %p3966_p13, %p4466_p7  ;;  %p3974_p10 = scmp.lt.s32.totalorder %s3972_s26, %s3965_s24 }
  0x51   : > { %s550_s23 = scalar_lea.hbm %s5200_s7, %s4448_s21 }
  0x52   : > { %p3969_p8 = pneg %p3968_p1  ;;  %p3975_p5 = por %p3974_p10, %p3973_p9 }
  0x54   : > { %p3976_p6 = pnand %p3975_p5, %p3969_p8 }
  0x56   : > { %3979 = shalt.err (!%p3976_p6)
}
  0x57   : > { %3629 = dma.hbm_to_vmem [thread:$0]  (!%p4457_p4), %s550_s23, 16, %s553_s0, %s5155_s4  }
  0x58   : > { %s3281_s5 = sshll.u32 %s4445_s20, 8  ;;  %s3419_s14 = sshll.u32 %s4276_s16, 12 }
  0x59   : > { %s5201_s9 = sld [smem:[#allocation49_spill]]  ;;  %s580_s13 = scalar_lea.vmem [#allocation15], %s3281_s5 }
  0x5a   : > { %s587_s26 = sshll.u32 %s580_s13, 4  ;;  %s5157_s1 = scalar_lea.sflag [#allocation16], %s4440_s19  ;;  %s588_s26 = int_to_ptr.vmem [resolvable:$true] %s587_s26 }
  0x5b   : > { %s3993_s22 = scalar_lea.vmem %s588_s26, 4096  ;;  %s4291_s15 = smov [#allocation15]  }
  0x5c   : > { %p3994_p11 = scmp.ne.s32.totalorder %s588_s26, %s3993_s22  ;;  %s3998_s24 = sshll.u32 %s4291_s15, 4  ;;  %s3999_s24 = int_to_ptr.vmem [resolvable:$false] %s3998_s24 }
  0x5d   : > { %s4000_s2 = scalar_lea.vmem %s3999_s24, 8192  ;;  %p4001_p1 = scmp.lt.s32.totalorder %s588_s26, %s3999_s24 }
  0x5e   : > { %p3996_p12 = pnand %p3994_p11, %p4466_p7  ;;  %p4002_p8 = scmp.lt.s32.totalorder %s4000_s2, %s3993_s22 }
  0x5f   : > { %s586_s8 = scalar_lea.hbm %s5201_s9, %s3419_s14 }
  0x60   : > { %p3997_p13 = pneg %p3996_p12  ;;  %p4003_p9 = por %p4002_p8, %p4001_p1 }
  0x62   : > { %p4004_p10 = pnand %p4003_p9, %p3997_p13 }
  0x64   : > { %4007 = shalt.err (!%p4004_p10)
}
  0x65   : > { %s4292_s23 = smov 256   ;;  %s4293_s0 = smov 16  }
  0x66   : > { %3635 = dma.hbm_to_vmem [thread:$0]  (!%p4457_p4), %s586_s8, 4096, %s588_s26, %s5157_s1, %s4292_s23, %s4292_s23, %s4293_s0  }
  0x67   : > { %s86_s2 = sadd.s32 1, %s4252_s27  ;;  %s5202_s11 = sld [smem:[#allocation51_spill]] }
  0x68   : > { %s4526_s22 = scalar_lea.vmem [#allocation17], %s3281_s5  ;;  %s4530_s24 = sadd.s32 4294967295, %s4284_s18  }
  0x69   : > { %s3268_s4 = sadd.s32 4294967294, %s4284_s18   ;;  %s50_s7 = sadd.s32 1, %s4276_s16 }
  0x6a   : > { %s53_s8 = sadd.s32 1, %s4280_s17  ;;  %s5203_s26 = sld [smem:[#allocation25_spill]] }
  0x6b   : > { %p51_p5 = scmp.ge.s32.totalorder %s50_s7, 2  ;;  %p67_p6 = scmp.ne.s32.totalorder %s4264_s30, %s4260_s29 }
  0x6c   : > { %p5158_p11 = scmp.ne.s32.totalorder %s4260_s29, %s4256_s28  ;;  %p74_p13 = scmp.eq.s32.totalorder %s4530_s24, 0 }
  0x6d   : > { %s4524_s13 = scalar_lea.hbm %s5202_s11, %s3419_s14  ;;  %s60_s14 = sadd.s32 1, %s4264_s30 }
  0x6e   : > { %s5259_s7 = smov (%p51_p5, %s50_s7), 0  ;;  %s5261_s8 = smov (!%p51_p5, %s53_s8), %s4280_s17 }
  0x6f   : > { %5204 = sst [smem:[#allocation35_spill]] %s5259_s7  ;;  %p4548_p12 = por %p68_p0, %p67_p6 }
  0x70   : > { %p55_p1 = scmp.ge.s32.totalorder %s5261_s8, 2  ;;  %s83_s23 = ssub.s32 %s4276_s16, %s5259_s7 }
  0x71   : > { %p4558_p8 = por %p74_p13, %p5158_p11  ;;  %p84_p9 = scmp.eq.s32.totalorder %s83_s23, 0 }
  0x72   : > { %s5263_s8 = smov (%p55_p1, %s5261_s8), 0  ;;  %p99_p0 = scmp.ne.s32.totalorder %s5203_s26, %s4244_s25 }
  0x73   : > { %s5206_s0 = scalar_select %p4558_p8, 1, 0 }
  0x74   : > { %5207 = sst [smem:[#allocation36_spill]] %s5263_s8  ;;  %s57_s3 = ssub.s32 %s4280_s17, %s5263_s8 }
  0x75   : > { %s4565_s6 = scalar_select %p84_p9, %s4252_s27, %s86_s2  }
  0x76   : > { %p58_p10 = scmp.eq.s32.totalorder %s57_s3, 0  ;;  %p409_p5 = scmp.eq.s32.totalorder %s4530_s24, 3 }
  0x77   : > { %5208 = sst [smem:[#allocation37_spill]] %s4565_s6  ;;  %p4572_p2 = por %p99_p0, %p74_p13 }
  0x78   : > { %p415_p11 = scmp.eq.s32.totalorder %s3268_s4, 3  ;;  %p4582_p1 = por %p409_p5, %p67_p6 }
  0x79   : > { %s4577_s15 = scalar_select %p58_p10, %s4264_s30, %s60_s14  }
  0x7a   : > { %p5212_p9 = scmp.ne.s32.totalorder %s4260_s29, %s4256_s28  ;;  %s435_s25 = sand.u32 1, %s4264_s30  }
  0x7b   : > { %5210 = sst [smem:[#allocation38_spill]] %s4577_s15  ;;  %s3272_s26 = sshll.u32 %s4280_s17, 7 }
  0x7c   : > { %p4589_p8 = por %p415_p11, %p5212_p9  ;;  %s3271_s3 = sshll.u32 %s435_s25, 3 }
  0x7d   : > { %s5215_s8 = sld [smem:[#allocation40_spill]]  ;;  %s439_s4 = scalar_lea.vmem [#allocation3], %s3271_s3 }
  0x7e   : > { %s5213_s2 = scalar_select %p4589_p8, 1, 0 }
  0x7f   : > { %s446_s14 = sshll.u32 %s439_s4, 4  ;;  %p5216_p13 = scmp.lt.s32.totalorder %s4284_s18, 4  ;;  %s447_s14 = int_to_ptr.vmem [resolvable:$true] %s446_s14 }
  0x80   : > { %5214 = sst [smem:[#allocation39_spill]] %s5213_s2  ;;  %s436_s17 = scalar_lea.sflag [#allocation4], %s435_s25 }
  0x81   : > { %p4602_p6 = pnand %p5216_p13, %p4548_p12  ;;  %s5218_s2 = sld [smem:[#allocation42_spill]] }
  0x82   : > { %s4021_s28 = scalar_lea.vmem %s447_s14, 128  ;;  %s4294_s9 = smov [#allocation3]  }
  0x83   : > { %s444_s7 = scalar_lea.hbm %s5215_s8, %s3272_s26  ;;  %p4010_p11 = pneg %p4602_p6 }
  0x84   : > { %p4022_p0 = scmp.ne.s32.totalorder %s447_s14, %s4021_s28  ;;  %s4026_s11 = sshll.u32 %s4294_s9, 4  ;;  %s4027_s11 = int_to_ptr.vmem [resolvable:$false] %s4026_s11 }
  0x85   : > { %s4028_s8 = scalar_lea.vmem %s4027_s11, 256  ;;  %p4029_p12 = scmp.lt.s32.totalorder %s447_s14, %s4027_s11 }
  0x86   : > { %p4024_p10 = pnand %p4022_p0, %p4010_p11  ;;  %p4030_p9 = scmp.lt.s32.totalorder %s4028_s8, %s4021_s28 }
  0x87   : > { %s478_s30 = scalar_lea.hbm %s5218_s2, %s4448_s21 }
  0x88   : > { %p4025_p5 = pneg %p4024_p10  ;;  %p4031_p13 = por %p4030_p9, %p4029_p12 }
  0x8a   : > { %p4032_p8 = pnand %p4031_p13, %p4025_p5 }
  0x8c   : > { %4035 = shalt.err (!%p4032_p8)
}
  0x8d   : > { %3614 = dma.hbm_to_vmem [thread:$0]  (!%p4602_p6), %s444_s7, 128, %s447_s14, %s436_s17  }
  0x8e   : > { %s473_s27 = scalar_lea.vmem [#allocation8], %s4445_s20  ;;  %s3276_s6 = sshll.u32 %s4445_s20, 6 }
  0x8f   : > { %s480_s5 = sshll.u32 %s473_s27, 4  ;;  %s4295_s26 = smov [#allocation8]   ;;  %s481_s5 = int_to_ptr.vmem [resolvable:$true] %s480_s5 }
  0x90   : > { %s4049_s25 = scalar_lea.vmem %s481_s5, 16  ;;  %s4054_s28 = sshll.u32 %s4295_s26, 4  ;;  %s4055_s28 = int_to_ptr.vmem [resolvable:$false] %s4054_s28 }
  0x91   : > { %p4050_p11 = scmp.ne.s32.totalorder %s481_s5, %s4049_s25  ;;  %s4056_s3 = scalar_lea.vmem %s4055_s28, 32 }
  0x92   : > { %p4057_p8 = scmp.lt.s32.totalorder %s481_s5, %s4055_s28  ;;  %p4058_p5 = scmp.lt.s32.totalorder %s4056_s3, %s4049_s25 }
  0x93   : > { %p4052_p0 = pnand %p4050_p11, %p4466_p7 }
  0x94   : > { %p4059_p12 = por %p4058_p5, %p4057_p8 }
  0x95   : > { %p4053_p10 = pneg %p4052_p0 }
  0x97   : > { %p4060_p9 = pnand %p4059_p12, %p4053_p10 }
  0x99   : > { %4063 = shalt.err (!%p4060_p9)
}
  0x9a   : > { %s5219_s7 = scalar_lea.sflag [#allocation7], %s4440_s19  ;;  %s3418_s4 = sshll.u32 %s4276_s16, 10 }
  0x9b   : > { %3620 = dma.hbm_to_vmem [thread:$0]  (!%p4457_p4), %s478_s30, 16, %s481_s5, %s5219_s7  }
  0x9c   : > { %s519_s14 = scalar_lea.vmem [#allocation11], %s3276_s6  ;;  %s5220_s27 = sld [smem:[#allocation45_spill]] }
  0x9d   : > { %s526_s9 = sshll.u32 %s519_s14, 4  ;;  %s4296_s28 = smov [#allocation11]   ;;  %s527_s9 = int_to_ptr.vmem [resolvable:$true] %s526_s9 }
  0x9e   : > { %s4077_s26 = scalar_lea.vmem %s527_s9, 1024  ;;  %s4082_s3 = sshll.u32 %s4296_s28, 4  ;;  %s4083_s3 = int_to_ptr.vmem [resolvable:$false] %s4082_s3 }
  0x9f   : > { %p4078_p6 = scmp.ne.s32.totalorder %s527_s9, %s4077_s26  ;;  %s4084_s17 = scalar_lea.vmem %s4083_s3, 2048 }
  0xa0   : > { %p4085_p0 = scmp.lt.s32.totalorder %s527_s9, %s4083_s3  ;;  %p4086_p10 = scmp.lt.s32.totalorder %s4084_s17, %s4077_s26 }
  0xa1   : > { %p4080_p13 = pnand %p4078_p6, %p4466_p7 }
  0xa2   : > { %s525_s25 = scalar_lea.hbm %s5220_s27, %s3418_s4  ;;  %p4087_p8 = por %p4086_p10, %p4085_p0 }
  0xa3   : > { %p4081_p11 = pneg %p4080_p13 }
  0xa5   : > { %p4088_p5 = pnand %p4087_p8, %p4081_p11 }
  0xa7   : > { %4091 = shalt.err (!%p4088_p5)
}
  0xa8   : > { %s4297_s30 = smov 64   ;;  %s4298_s5 = smov 4  }
  0xa9   : > { %s5221_s6 = scalar_lea.sflag [#allocation10], %s4440_s19  ;;  %s5222_s4 = sld [smem:[#allocation48_spill]] }
  0xaa   : > { %3626 = dma.hbm_to_vmem [thread:$0]  (!%p4457_p4), %s525_s25, 1024, %s527_s9, %s5221_s6, %s4297_s30, %s4297_s30, %s4298_s5  }
  0xab   : > { %s5223_s11 = sshll.u32 %s4526_s22, 4  ;;  %s562_s8 = scalar_lea.vmem [#allocation14], %s4445_s20  ;;  %s4646_s11 = int_to_ptr.vmem [resolvable:$true] %s5223_s11 }
  0xac   : > { %s569_s27 = sshll.u32 %s562_s8, 4  ;;  %s4299_s28 = smov [#allocation14]   ;;  %s570_s27 = int_to_ptr.vmem [resolvable:$true] %s569_s27 }
  0xad   : > { %s4105_s26 = scalar_lea.vmem %s570_s27, 16  ;;  %s4110_s3 = sshll.u32 %s4299_s28, 4  ;;  %s4111_s3 = int_to_ptr.vmem [resolvable:$false] %s4110_s3 }
  0xae   : > { %p4106_p12 = scmp.ne.s32.totalorder %s570_s27, %s4105_s26  ;;  %s4112_s17 = scalar_lea.vmem %s4111_s3, 32 }
  0xaf   : > { %s567_s14 = scalar_lea.hbm %s5222_s4, %s4448_s21  ;;  %p4113_p13 = scmp.lt.s32.totalorder %s570_s27, %s4111_s3 }
  0xb0   : > { %p4108_p9 = pnand %p4106_p12, %p4466_p7  ;;  %p4114_p11 = scmp.lt.s32.totalorder %s4112_s17, %s4105_s26 }
  0xb2   : > { %p4109_p6 = pneg %p4108_p9  ;;  %p4115_p0 = por %p4114_p11, %p4113_p13 }
  0xb4   : > { %p4116_p10 = pnand %p4115_p0, %p4109_p6 }
  0xb6   : > { %4119 = shalt.err (!%p4116_p10)
}
  0xb7   : > { %s5224_s20 = scalar_lea.sflag [#allocation13], %s4440_s19  ;;  %s4133_s21 = scalar_lea.vmem %s4646_s11, 4096 }
  0xb8   : > { %3632 = dma.hbm_to_vmem [thread:$0]  (!%p4457_p4), %s567_s14, 16, %s570_s27, %s5224_s20  }
  0xb9   : > { %p4134_p8 = scmp.ne.s32.totalorder %s4646_s11, %s4133_s21  ;;  %s4300_s22 = smov [#allocation17]  }
  0xba   : > { %s4138_s9 = sshll.u32 %s4300_s22, 4  ;;  %s4139_s9 = int_to_ptr.vmem [resolvable:$false] %s4138_s9 }
  0xbb   : > { %p4136_p5 = pnand %p4134_p8, %p4466_p7  ;;  %s4140_s25 = scalar_lea.vmem %s4139_s9, 8192 }
  0xbc   : > { %p4141_p9 = scmp.lt.s32.totalorder %s4646_s11, %s4139_s9  ;;  %p4142_p6 = scmp.lt.s32.totalorder %s4140_s25, %s4133_s21 }
  0xbd   : > { %p4137_p12 = pneg %p4136_p5 }
  0xbe   : > { %p4143_p13 = por %p4142_p6, %p4141_p9 }
  0xc0   : > { %p4144_p11 = pnand %p4143_p13, %p4137_p12 }
  0xc2   : > { %4147 = shalt.err (!%p4144_p11)
}
  0xc3   : > { %s5225_s6 = scalar_lea.sflag [#allocation16], %s4440_s19  ;;  %633 = sbr.rel (%p4480_p3) target bundleno = 2765 (0xacd), region = 72 }
  0xc4   : > { %3638 = dma.hbm_to_vmem [thread:$0]  (!%p4457_p4), %s4524_s13, 4096, %s4646_s11, %s5225_s6, %s4297_s30, %s4297_s30, %s4298_s5  }
  0xc5   : > { %s4672_s7 = sand.u32 (!%p4480_p3), 1, %s4260_s29   ;;  %p5227_p7 = scmp.ne.s32.totalorder (!%p4480_p3), %s5206_s0, 0 }
  0xc6   : > { %s5167_s15 = sshll.u32 (!%p4480_p3), %s4672_s7, 3  ;;  %s636_s10 = scalar_lea.sflag (!%p4480_p3), [#allocation4], %s4672_s7 }
  0xc7   : > { %s4678_s4 = scalar_lea.vmem (!%p4480_p3), [#allocation3], %s5167_s15 }
  0xc8   : > { %4219 = dma.done.wait (%p5227_p7), %s636_s10, 128  }
  0xc9   : > { %4221 = vsyncadd (%p5227_p7), %s636_s10, 4294967168  ;;  %s5228_s19 = sld [smem:[#allocation25_spill]]  ;;  %s644_s13 = sand.u32 1, %s4530_s24  }
  0xca   : > { %s645_s5 = scalar_lea.sflag [#allocation7], %s644_s13 }
  0xcf   : > { %s4686_s30 = sand.u32 1, %s5228_s19  }
  0xd0   : > { %4223 = dma.done.wait (%p4572_p2), %s645_s5, 32  }
  0xd1   : > { %4225 = vsyncadd (%p4572_p2), %s645_s5, 4294967264  ;;  %s3589_s11 = smul.u32 192, %s4686_s30  ;;  %s661_s8 = scalar_lea.sflag [#allocation10], %s644_s13 }
  0xd3   : > { %s4695_s27 = scalar_lea.vmem [#allocation9], %s3589_s11 }
  0xd4   : > { %4227 = dma.done.wait (%p4572_p2), %s661_s8, 4096  }
  0xd5   : > { %4229 = vsyncadd (%p4572_p2), %s661_s8, 4294963200  ;;  %s3289_s24 = sshll.u32 %s4686_s30, 6  ;;  %s679_s28 = scalar_lea.sflag [#allocation13], %s644_s13 }
  0xd6   : > { %s4702_s26 = scalar_lea.vmem [#allocation11], %s3289_s24 }
  0xd7   : > { %4231 = dma.done.wait (%p4572_p2), %s679_s28, 32  }
  0xd8   : > { %4233 = vsyncadd (%p4572_p2), %s679_s28, 4294967264  ;;  %s3290_s17 = sshll.u32 %s4686_s30, 8  ;;  %s695_s21 = scalar_lea.sflag [#allocation16], %s644_s13 }
  0xd9   : > { %s4711_s22 = scalar_lea.vmem [#allocation15], %s3290_s17 }
  0xda   : > { %4235 = dma.done.wait (%p4572_p2), %s695_s21, 8192  }
  0xdb   : > { %4237 = vsyncadd (%p4572_p2), %s695_s21, 4294959104  ;;  %s5229_s9 = sld [smem:[#allocation30_spill]]  ;;  %s4741_s16 = scalar_lea.vmem [#allocation17], %s3290_s17 }
  0xdc   : > { %s5230_s19 = sld [smem:[#allocation46_spill]]  ;;  %s5234_s29 = sshll.u32 %s4672_s7, 3 }
  0xdd   : > { %s5231_s1 = sld [smem:[#allocation52_spill]]  ;;  %s4745_s12 = scalar_lea.vmem [#allocation18], %s5234_s29 }
  0xde   : > { %s5232_s20 = sld [smem:[#allocation44_spill]] }
  0xdf   : > { %s5233_s15 = sld [smem:[#allocation50_spill]] }
  0xe1   : > { %p800_p4 = scmp.lt.s32.totalorder %s5229_s9, 1  ;;  %p3294_p2 = scmp.ne.s32.totalorder %s5229_s9, 0 }
  0xe3   : > { %s4719_s25 = scalar_select %p800_p4, %s5229_s9, 1 }
  0xe4   : > { %818 = sbr.rel (%p3294_p2) target bundleno = 235 (0xeb), region = 112 }
  0xe5   : > { %s3590_s6 = smul.u32 3, %s4719_s25  ;;  %s806_s13 = scalar_lea.vmem %s5230_s19, %s4719_s25 }
  0xe6   : > { %s3293_s5 = sshll.u32 %s4719_s25, 2  ;;  %s813_s24 = scalar_lea.vmem %s5231_s1, %s4719_s25 }
  0xe7   : > { %s4734_s3 = scalar_lea.vmem %s5232_s20, %s3590_s6  ;;  %s4739_s2 = scalar_lea.vmem %s5233_s15, %s3293_s5 }
  0xe9   : > { %v819_v0 = vld [vmem:[%s4678_s4] sm:$0xff] }
  0xea   : > { %820 = vst [vmem:[#allocation2] sm:$0xff] %v819_v0 }
  0xeb PF: > { %v3747_v2 = vld [vmem:[%s4695_s27 + $0xac] ss:$12 sps:$4 sm:$0xff]   ;;  %v3749_v3 = vld [vmem:[%s4695_s27 + $0xa8] ss:$12 sps:$4 sm:$0xff]   ;;  %v4301_v4 = vmov 0.0   ;;  %v4302_v23 = vmov 0   ;;  %v885_v42 = vlaneseq }
  0xec   : > { %3499 = vmatprep.subr.bf16.mxu1 %v4301_v4  ;;  %v3750_v5 = vld [vmem:[%s4695_s27 + $0xb0] ss:$12 sps:$4 sm:$0xff]   ;;  %v3751_v6 = vld [vmem:[%s4695_s27 + $0x94] ss:$12 sps:$4 sm:$0xff]   ;;  %1028 = vmatprep.subr.bf16.mxu0 %v3747_v2  ;;  %v3754_v8 = vld [vmem:[%s4695_s27 + $0x98] ss:$12 sps:$4 sm:$0xff]  }
  0xed   : > { %v3753_v7 = vld [vmem:[%s4695_s27 + $0x90] ss:$12 sps:$4 sm:$0xff]   ;;  %1029 = vmatpush1.bf16.msra.mxu0 %v3749_v3  ;;  %3500 = vmatpush3.bf16.msra.mxu1 %v3750_v5  ;;  %v3757_v14 = vld [vmem:[%s4695_s27 + $0x78] ss:$12 sps:$4 sm:$0xff]   ;;  %v3758_v15 = vld [vmem:[%s4695_s27 + $0x80] ss:$12 sps:$4 sm:$0xff]  }
  0xee   : > { %1030 = vmatprep.subr.bf16.mxu0 %v3751_v6  ;;  %3501 = vmatprep.subr.bf16.mxu1 %v4301_v4  ;;  %v3755_v13 = vld [vmem:[%s4695_s27 + $0x7c] ss:$12 sps:$4 sm:$0xff]   ;;  %v3759_v16 = vld [vmem:[%s4695_s27 + $0x64] ss:$12 sps:$4 sm:$0xff]   ;;  %v3761_v17 = vld [vmem:[%s4695_s27 + $0x60] ss:$12 sps:$4 sm:$0xff]  }
  0xef   : > { %v3762_v18 = vld [vmem:[%s4695_s27 + $0x68] ss:$12 sps:$4 sm:$0xff]   ;;  %v3763_v19 = vld [vmem:[%s4695_s27 + $0x4c] ss:$12 sps:$4 sm:$0xff]   ;;  %v3766_v21 = vld [vmem:[%s4695_s27 + $0x50] ss:$12 sps:$4 sm:$0xff]   ;;  %1060 = vmatprep.mubr.bf16.mxu0 %v4302_v23 }
  0xf0   : > { %v3765_v20 = vld [vmem:[%s4695_s27 + $0x48] ss:$12 sps:$4 sm:$0xff]   ;;  %vm4303_vm0 = vmmov 0   ;;  %v3769_v24 = vld [vmem:[%s4695_s27 + $0x30] ss:$12 sps:$4 sm:$0xff]   ;;  %s5235_s29 = scalar_lea.vmem [#allocation6], %s4686_s30 }
  0xf1   : > { %v821_v1 = vld [vmem:[#allocation2] sm:$0xff]  ;;  %1031 = vmatpush1.bf16.msra.mxu0 %v3753_v7  ;;  %3502 = vmatpush3.bf16.msra.mxu1 %v3754_v8  ;;  %v3767_v22 = vld [vmem:[%s4695_s27 + $0x34] ss:$12 sps:$4 sm:$0xff]   ;;  %s5236_s15 = scalar_lea.vmem [#allocation8], %s4686_s30  ;;  %v4795_v43 = vshrl.u32 %v885_v42, 7  ;;  %s4304_s4 = smov 32  }
  0xf2   : > { %824 = vadd.xlane.f32.xlu0 %v821_v1  ;;  %3503 = vmatprep.subr.bf16.mxu1 %v4301_v4  ;;  %v3770_v25 = vld [vmem:[%s4695_s27 + $0x38] ss:$12 sps:$4 sm:$0xff]   ;;  %v3771_v26 = vld [vmem:[%s4695_s27 + $0x1c] ss:$12 sps:$4 sm:$0xff]   ;;  %v3774_v28 = vld [vmem:[%s4695_s27 + $0x20] ss:$12 sps:$4 sm:$0xff]  }
  0xf3   : > { %1032 = vmatprep.subr.bf16.mxu0 %v3755_v13  ;;  %3515 = vmatprep.mubr.msk.bf16.mxu1 %vm4303_vm0, %v4301_v4  ;;  %v3773_v27 = vld [vmem:[%s4695_s27 + $0x18] ss:$12 sps:$4 sm:$0xff]   ;;  %v3777_v30 = vld [vmem:[%s4695_s27] ss:$12 sps:$4 sm:$0xff]   ;;  %v3778_v31 = vld [vmem:[%s4695_s27 + $0x8] ss:$12 sps:$4 sm:$0xff]  }
  0xf4   : > { %v3775_v29 = vld [vmem:[%s4695_s27 + $0x4] ss:$12 sps:$4 sm:$0xff]   ;;  %v891_v44 = vsub.s32 1, %v4795_v43  ;;  %v887_v51 = vsub.s32 0, %v4795_v43  ;;  %s4305_s14 = smov 96   ;;  %s4306_s0 = smov 64  }
  0xf5   : > { %1033 = vmatpush1.bf16.msra.mxu0 %v3757_v14  ;;  %3504 = vmatpush3.bf16.msra.mxu1 %v3758_v15  ;;  %v3295_v36 = vld [vmem:[%s5235_s29] ss:$0 sm:$0xff]  ;;  %v4307_v59 = vmov 1983009808   ;;  %v4308_v61 = vmov 1934713408  }
  0xf6   : > { %3505 = vmatprep.subr.bf16.mxu1 %v4301_v4  ;;  %1034 = vmatprep.subr.bf16.mxu0 %v3759_v16  ;;  %v3296_v38 = vld [vmem:[%s5236_s15] ss:$0 sm:$0xff]  ;;  %v1122_v60 = vunpack.c.l.s4 %v4307_v59  ;;  %v1154_v62 = vunpack.c.l.s4 %v4308_v61  ;;  %vm1555_vm1 = vcmask 261120   ;;  %vm1751_vm3 = vcmask 64512   ;;  %s5238_s17 = scalar_lea.vmem [#allocation12], %s4686_s30  ;;  %s5239_s20 = scalar_lea.vmem [#allocation14], %s4686_s30 }
  0xf7   : > { %v4799_v45 = vld [vmem:[%s4734_s3] sm:$0x7]  ;;  %vm1807_vm4 = vcmask 1043456   ;;  %vm2138_vm5 = vcmask 523264   ;;  %vm2140_vm6 = vcmask 785408  }
  0xf8   : > { %v892_v46 = vrot.slane %v4799_v45, %v891_v44  ;;  %v888_v57 = vrot.slane %v4799_v45, %v887_v51  ;;  %v1123_v63 = vunpack.c.0.s8 %v1122_v60  ;;  %v1155_v2 = vunpack.c.0.s8 %v1154_v62 }
  0xf9   : > { %1035 = vmatpush1.bf16.msra.mxu0 %v3761_v17  ;;  %3506 = vmatpush3.bf16.msra.mxu1 %v3762_v18 }
  0xfa   : > { %1036 = vmatprep.subr.bf16.mxu0 %v3763_v19  ;;  %3507 = vmatprep.subr.bf16.mxu1 %v4301_v4  ;;  %v4817_v3 = vsub.s32 %v1123_v63, %v4795_v43 }
  0xfd   : > { %1037 = vmatpush1.bf16.msra.mxu0 %v3765_v20  ;;  %3508 = vmatpush3.bf16.msra.mxu1 %v3766_v21 }
  0xfe   : > { %1038 = vmatprep.subr.bf16.mxu0 %v3767_v22  ;;  %3509 = vmatprep.subr.bf16.mxu1 %v4301_v4 }
 0x101   : > { %1039 = vmatpush1.bf16.msra.mxu0 %v3769_v24  ;;  %3510 = vmatpush3.bf16.msra.mxu1 %v3770_v25 }
 0x102   : > { %1040 = vmatprep.subr.bf16.mxu0 %v3771_v26  ;;  %3511 = vmatprep.subr.bf16.mxu1 %v4301_v4 }
 0x105   : > { %1041 = vmatpush1.bf16.msra.mxu0 %v3773_v27  ;;  %3512 = vmatpush3.bf16.msra.mxu1 %v3774_v28 }
 0x106   : > { %1042 = vmatprep.subr.bf16.mxu0 %v3775_v29  ;;  %3513 = vmatprep.subr.bf16.mxu1 %v4301_v4 }
 0x109   : > { %1043 = vmatpush1.bf16.msra.mxu0 %v3777_v30  ;;  %3514 = vmatpush3.bf16.msra.mxu1 %v3778_v31 }
 0x10a   : > { %3519 = vmatprep.subr.bf16.mxu1 %v4301_v4  ;;  %3543 = vmatprep.subr.bf16.mxu0 %v4301_v4 }
 0x17b   : > { %v825_v9 = vpop.xlane.xlu0 %824 }
 0x17c   : > { %v827_v10 = vmul.f32 0.0078125, %v825_v9 }
 0x17e   : > { %v828_v11 = vsub.f32 %v821_v1, %v827_v10  ;;  %v4820_v10 = vsub.s32 %v1155_v2, %v4795_v43 }
 0x180   : > { %v829_v12 = vmul.f32 %v828_v11, %v828_v11 }
 0x182   : > { %830 = vadd.xlane.f32.xlu0 %v829_v12 }
 0x20b   : > { %v831_v32 = vpop.xlane.xlu0 %830 }
 0x20c   : > { %v832_v33 = vmul.f32 0.0078125, %v831_v32 }
 0x20e   : > { %v833_v34 = vadd.f32 1e-05, %v832_v33 }
 0x210   : > { %3867 = vrsqrt.f32 %v833_v34 }
 0x21d   : > { %v3868_v35 = vpop.eup %3867 }
 0x21e   : > { %v835_v37 = vmul.f32 %v3868_v35, %v828_v11 }
 0x220   : > { %v842_v39 = vmul.f32 %v3295_v36, %v835_v37 }
 0x222   : > { %v849_v40 = vadd.f32 %v3296_v38, %v842_v39 }
 0x224   : > { %v850_v41 = vpack.c.bf16 %v849_v40, %v849_v40 }
 0x226   : > { %1061 = vmatmul.mubr.bf16.vlgmr.msra.gmra.mxu0 %v850_v41  ;;  %3516 = vmatmul.mubr.bf16.vlgmr.msra.gmra.mxu1 %v850_v41 }
 0x227   : > { %3521 = vmatprep.mubr.msk.bf16.mxu1 %vm4303_vm0, %v4301_v4  ;;  %3545 = vmatprep.mubr.msk.bf16.mxu0 %vm4303_vm0, %v4301_v4 }
 0x2e6   : > { %v1062_v47 = vpop.f32.mrf.mxu0  ;;  %v4804_v48 = vpop.f32.mrf.mxu1 }
 0x2e7   : > { %v1063_v58 = vadd.f32 %v1062_v47, %v888_v57 }
 0x2e8   : > { %v1064_v49 = vpop.f32.mrf.mxu0  ;;  %v3517_v50 = vpop.f32.mrf.mxu1 }
 0x2e9   : > { %v1065_v52 = vadd.f32 %v1064_v49, %v892_v46 }
 0x2ea   : > { %v1066_v53 = vpop.f32.mrf.mxu0  ;;  %v1106_v54 = vpop.f32.mrf.mxu1 }
 0x2eb   : > { %1262 = vrot.lane.b32.xlu0 %v1065_v52, %s4304_s4  ;;  %1256 = vrot.lane.b32.xlu1 %v1065_v52, %s4305_s14 }
 0x2ec   : > { %v1067_v55 = vpop.f32.mrf.mxu0  ;;  %v3518_v56 = vpop.f32.mrf.mxu1 }
 0x2ef   : > { %1259 = vrot.lane.b32.xlu1 %v1065_v52, %s4306_s0 }
 0x2f3   : > { %1110 = vrot.lane.b32.xlu1 %v1063_v58, %s4305_s14 }
 0x2f7   : > { %1113 = vrot.lane.b32.xlu1 %v1063_v58, %s4306_s0 }
 0x2fb   : > { %1116 = vrot.lane.b32.xlu1 %v1063_v58, %s4304_s4 }
 0x35d   : > { %v1263_v0 = vpop.permute.xlu0 %1262  ;;  %v1257_v1 = vpop.permute.xlu1 %1256 }
 0x35e   : > { %v1281_v5 = vcombine.low %v1257_v1, %v1263_v0  ;;  %v1282_v6 = vcombine.high %v1257_v1, %v1263_v0 }
 0x360   : > { %v1289_v11 = vrot.slane %v1281_v5, %v4817_v3  ;;  %v1296_v12 = vrot.slane %v1282_v6, %v4817_v3 }
 0x361   : > { %v1260_v7 = vpop.permute.xlu1 %1259 }
 0x362   : > { %v1265_v8 = vcombine.low %v1065_v52, %v1260_v7  ;;  %v1266_v9 = vcombine.high %v1065_v52, %v1260_v7 }
 0x364   : > { %v1273_v13 = vrot.slane %v1265_v8, %v4817_v3  ;;  %v1280_v14 = vrot.slane %v1266_v9, %v4817_v3 }
 0x365   : > { %v1111_v15 = vpop.permute.xlu1 %1110 }
 0x366   : > { %v1297_v16 = vcombine.low %v1273_v13, %v1289_v11  ;;  %v1298_v17 = vcombine.high %v1273_v13, %v1289_v11  ;;  %v1313_v18 = vcombine.low %v1280_v14, %v1296_v12  ;;  %v1314_v19 = vcombine.high %v1280_v14, %v1296_v12 }
 0x368   : > { %v1305_v20 = vrot.slane %v1297_v16, %v4820_v10  ;;  %v1312_v21 = vrot.slane %v1298_v17, %v4820_v10  ;;  %v1321_v22 = vrot.slane %v1313_v18, %v4820_v10  ;;  %v1328_v24 = vrot.slane %v1314_v19, %v4820_v10 }
 0x369   : > { %v1114_v25 = vpop.permute.xlu1 %1113 }
 0x36a   : > { %v1333_v26 = vcombine.low %v1305_v20, %v1312_v21  ;;  %v3323_v27 = vcombine.high %v1305_v20, %v1312_v21  ;;  %v1349_v28 = vcombine.low %v1321_v22, %v1328_v24  ;;  %v3324_v29 = vcombine.high %v1321_v22, %v1328_v24 }
 0x36b   : > { %v1119_v30 = vcombine.low %v1063_v58, %v1114_v25  ;;  %v1120_v31 = vcombine.high %v1063_v58, %v1114_v25 }
 0x36c   : > { %v1340_v32 = vrot.slane %v1333_v26, %v4817_v3  ;;  %v1348_v33 = vrot.slane %v3323_v27, %v4817_v3  ;;  %v1356_v34 = vrot.slane %v1349_v28, %v4817_v3  ;;  %v1364_v35 = vrot.slane %v3324_v29, %v4817_v3 }
 0x36d   : > { %v1117_v36 = vpop.permute.xlu1 %1116  ;;  %v1127_v41 = vrot.slane %v1119_v30, %v4817_v3  ;;  %v1134_v46 = vrot.slane %v1120_v31, %v4817_v3 }
 0x36e   : > { %v1135_v37 = vcombine.low %v1111_v15, %v1117_v36  ;;  %v1136_v38 = vcombine.high %v1111_v15, %v1117_v36  ;;  %v1365_v39 = vcombine.low %v1340_v32, %v1348_v33  ;;  %v1381_v40 = vcombine.low %v1356_v34, %v1364_v35 }
 0x36f   : > { %v1366_v11 = vcombine.high %v1340_v32, %v1348_v33  ;;  %v1382_v15 = vcombine.high %v1356_v34, %v1364_v35 }
 0x370   : > { %v1143_v47 = vrot.slane %v1135_v37, %v4817_v3  ;;  %v1150_v49 = vrot.slane %v1136_v38, %v4817_v3  ;;  %v1373_v50 = vrot.slane %v1365_v39, %v4820_v10  ;;  %v1389_v52 = vrot.slane %v1381_v40, %v4820_v10 }
 0x371   : > { %v1380_v20 = vrot.slane %v1366_v11, %v4820_v10  ;;  %v1396_v21 = vrot.slane %v1382_v15, %v4820_v10 }
 0x372   : > { %v1151_v53 = vcombine.low %v1127_v41, %v1143_v47  ;;  %v1152_v54 = vcombine.high %v1127_v41, %v1143_v47  ;;  %v1167_v55 = vcombine.low %v1134_v46, %v1150_v49  ;;  %v1168_v56 = vcombine.high %v1134_v46, %v1150_v49 }
 0x373   : > { %v1397_v57 = vcombine.low %v1373_v50, %v1389_v52  ;;  %v1398_v14 = vcombine.high %v1373_v50, %v1389_v52  ;;  %v1399_v25 = vcombine.low %v1380_v20, %v1396_v21  ;;  %v1400_v34 = vcombine.high %v1380_v20, %v1396_v21 }
 0x374   : > { %v1159_v58 = vrot.slane %v1151_v53, %v4820_v10  ;;  %v1166_v59 = vrot.slane %v1152_v54, %v4820_v10  ;;  %v1175_v60 = vrot.slane %v1167_v55, %v4820_v10  ;;  %v1182_v61 = vrot.slane %v1168_v56, %v4820_v10 }
 0x375   : > { %v1551_v62 = vpack.c.bf16 %v1397_v57, %v1397_v57  ;;  %v1552_v19 = vpack.c.bf16 %v1398_v14, %v1398_v14  ;;  %v1553_v29 = vpack.c.bf16 %v1399_v25, %v1399_v25  ;;  %v1554_v36 = vpack.c.bf16 %v1400_v34, %v1400_v34 }
 0x376   : > { %v1187_v63 = vcombine.low %v1159_v58, %v1166_v59  ;;  %v3321_v0 = vcombine.high %v1159_v58, %v1166_v59  ;;  %v1203_v1 = vcombine.low %v1175_v60, %v1182_v61  ;;  %v3322_v2 = vcombine.high %v1175_v60, %v1182_v61 }
 0x377   : > { %v1560_v5 = vsel %vm1555_vm1, %v1551_v62, 0  ;;  %v1606_v24 = vsel %vm1555_vm1, %v1552_v19, 0  ;;  %v1652_v33 = vsel %vm1555_vm1, %v1553_v29, 0  ;;  %v1698_v38 = vsel %vm1555_vm1, %v1554_v36, 0 }
 0x378   : > { %v1194_v6 = vrot.slane %v1187_v63, %v4817_v3  ;;  %v1202_v7 = vrot.slane %v3321_v0, %v4817_v3  ;;  %v1210_v8 = vrot.slane %v1203_v1, %v4817_v3  ;;  %v1218_v9 = vrot.slane %v3322_v2, %v4817_v3  ;;  %3520 = vmatpush3.bf16.xpose.msra.mxu1 %v1560_v5 }
 0x379   : > { %3525 = vmatprep.subr.bf16.mxu1 %v4301_v4  ;;  %v1743_v41 = vand.u32 127, %v885_v42 }
 0x37a   : > { %v1219_v12 = vcombine.low %v1194_v6, %v1202_v7  ;;  %v1235_v13 = vcombine.low %v1210_v8, %v1218_v9  ;;  %v1220_v26 = vcombine.high %v1194_v6, %v1202_v7  ;;  %v1236_v27 = vcombine.high %v1210_v8, %v1218_v9 }
 0x37b   : > { %vm1744_vm2 = vcmp.le.s32.totalorder %v1743_v41, %v4795_v43  ;;  %v895_v9 = vsub.s32 2, %v4795_v43 }
 0x37c   : > { %v1227_v16 = vrot.slane %v1219_v12, %v4820_v10  ;;  %v1243_v17 = vrot.slane %v1235_v13, %v4820_v10  ;;  %v1234_v31 = vrot.slane %v1220_v26, %v4820_v10  ;;  %v1250_v32 = vrot.slane %v1236_v27, %v4820_v10 }
 0x37d   : > { %v896_v11 = vrot.slane %v4799_v45, %v895_v9 }
 0x37e   : > { %v1251_v18 = vcombine.low %v1227_v16, %v1243_v17  ;;  %v1252_v28 = vcombine.high %v1227_v16, %v1243_v17  ;;  %v1253_v35 = vcombine.low %v1234_v31, %v1250_v32  ;;  %v1254_v39 = vcombine.high %v1234_v31, %v1250_v32 }
 0x37f   : > { %v1104_v12 = vadd.f32 %v4804_v48, %v896_v11 }
 0x380   : > { %v1547_v22 = vpack.c.bf16 %v1251_v18, %v1251_v18  ;;  %v1548_v30 = vpack.c.bf16 %v1252_v28, %v1252_v28  ;;  %v1549_v37 = vpack.c.bf16 %v1253_v35, %v1253_v35  ;;  %v1550_v40 = vpack.c.bf16 %v1254_v39, %v1254_v39 }
 0x382   : > { %3522 = vmatmul.mubr.msk.bf16.vlgmr.msra.gmra.mxu1 %vm1555_vm1, %v1547_v22 }
 0x383   : > { %3526 = vmatpush3.bf16.xpose.msra.mxu1 %v1606_v24  ;;  %3527 = vmatprep.mubr.msk.bf16.mxu1 %vm4303_vm0, %v4301_v4 }
 0x384   : > { %3531 = vmatprep.subr.bf16.mxu1 %v4301_v4 }
 0x38a   : > { %3528 = vmatmul.mubr.msk.bf16.vlgmr.msra.gmra.mxu1 %vm1555_vm1, %v1548_v30 }
 0x38b   : > { %3532 = vmatpush3.bf16.xpose.msra.mxu1 %v1652_v33  ;;  %3533 = vmatprep.mubr.msk.bf16.mxu1 %vm4303_vm0, %v4301_v4 }
 0x38c   : > { %3537 = vmatprep.subr.bf16.mxu1 %v4301_v4 }
 0x392   : > { %3534 = vmatmul.mubr.msk.bf16.vlgmr.msra.gmra.mxu1 %vm1555_vm1, %v1549_v37 }
 0x393   : > { %3538 = vmatpush3.bf16.xpose.msra.mxu1 %v1698_v38  ;;  %3539 = vmatprep.mubr.msk.bf16.mxu1 %vm4303_vm0, %v4301_v4 }
 0x394   : > { %3549 = vmatprep.subr.bf16.mxu1 %v4301_v4 }
 0x39a   : > { %3540 = vmatmul.mubr.msk.bf16.vlgmr.msra.gmra.mxu1 %vm1555_vm1, %v1550_v40 }
 0x39b   : > { %3551 = vmatprep.mubr.msk.bf16.mxu1 %vm4303_vm0, %v4301_v4 }
 0x442   : > { %v1596_v46 = vpop.f32.mrf.mxu1 }
 0x443   : > { %v1747_v47 = vsel %vm1744_vm2, %v1596_v46, -1e+30 }
 0x444   : > { %v3523_v49 = vpop.f32.mrf.mxu1  ;;  %v1752_v50 = vsel %vm1751_vm3, %v1747_v47, -inf }
 0x445   : > { %1753 = vmax.xlane.f32.xlu1 %v1752_v50 }
 0x446   : > { %v1599_v52 = vpop.f32.mrf.mxu1 }
 0x448   : > { %v3524_v53 = vpop.f32.mrf.mxu1 }
 0x44a   : > { %v1642_v54 = vpop.f32.mrf.mxu1 }
 0x44b   : > { %v1748_v55 = vsel %vm1744_vm2, %v1642_v54, -1e+30 }
 0x44c   : > { %v3529_v56 = vpop.f32.mrf.mxu1  ;;  %v1755_v42 = vsel %vm1751_vm3, %v1748_v55, -inf }
 0x44d   : > { %1756 = vmax.xlane.f32.xlu0 %v1755_v42 }
 0x44e   : > { %v1645_v57 = vpop.f32.mrf.mxu1 }
 0x450   : > { %v3530_v58 = vpop.f32.mrf.mxu1 }
 0x452   : > { %v1688_v59 = vpop.f32.mrf.mxu1 }
 0x453   : > { %v1749_v60 = vsel %vm1744_vm2, %v1688_v59, -1e+30 }
 0x454   : > { %v3535_v61 = vpop.f32.mrf.mxu1  ;;  %v1758_v62 = vsel %vm1751_vm3, %v1749_v60, -inf }
 0x455   : > { %1759 = vmax.xlane.f32.xlu1 %v1758_v62 }
 0x456   : > { %v1691_v63 = vpop.f32.mrf.mxu1 }
 0x458   : > { %v3536_v0 = vpop.f32.mrf.mxu1 }
 0x45a   : > { %v1734_v1 = vpop.f32.mrf.mxu1 }
 0x45b   : > { %v1750_v2 = vsel %vm1744_vm2, %v1734_v1, -1e+30 }
 0x45c   : > { %v3541_v5 = vpop.f32.mrf.mxu1  ;;  %v1761_v6 = vsel %vm1751_vm3, %v1750_v2, -inf }
 0x45d   : > { %1762 = vmax.xlane.f32.xlu1 %v1761_v6 }
 0x45e   : > { %v1737_v7 = vpop.f32.mrf.mxu1 }
 0x460   : > { %v3542_v8 = vpop.f32.mrf.mxu1 }
 0x46e   : > { %1405 = vrot.lane.b32.xlu1 %v1104_v12, %s4306_s0 }
 0x4ce   : > { %v1754_v13 = vpop.xlane.xlu1 %1753 }
 0x4cf   : > { %v1764_v14 = vsub.f32 %v1747_v47, %v1754_v13 }
 0x4d1   : > { %v1768_v15 = vmul.f32 1.442695, %v1764_v14 }
 0x4d3   : > { %3869 = vpow2.f32 %v1768_v15 }
 0x4d6   : > { %v1757_v16 = vpop.xlane.xlu0 %1756 }
 0x4d7   : > { %v1765_v17 = vsub.f32 %v1748_v55, %v1757_v16 }
 0x4d9   : > { %v1770_v18 = vmul.f32 1.442695, %v1765_v17 }
 0x4db   : > { %3871 = vpow2.f32 %v1770_v18 }
 0x4de   : > { %v1760_v48 = vpop.xlane.xlu1 %1759 }
 0x4df   : > { %v1766_v22 = vsub.f32 %v1749_v60, %v1760_v48 }
 0x4e0   : > { %v4894_v19 = vpop.eup %3869 }
 0x4e1   : > { %v1776_v20 = vsel %vm1751_vm3, %v4894_v19, 0.0  ;;  %v1772_v24 = vmul.f32 1.442695, %v1766_v22 }
 0x4e2   : > { %1777 = vadd.xlane.f32.xlu0 %v1776_v20 }
 0x4e3   : > { %3873 = vpow2.f32 %v1772_v24 }
 0x4e6   : > { %v1763_v25 = vpop.xlane.xlu1 %1762 }
 0x4e7   : > { %v1767_v26 = vsub.f32 %v1750_v2, %v1763_v25 }
 0x4e8   : > { %v4898_v21 = vpop.eup %3871 }
 0x4e9   : > { %v1779_v45 = vsel %vm1751_vm3, %v4898_v21, 0.0  ;;  %v1774_v27 = vmul.f32 1.442695, %v1767_v26 }
 0x4ea   : > { %1780 = vadd.xlane.f32.xlu1 %v1779_v45  ;;  %v1406_v32 = vpop.permute.xlu1 %1405 }
 0x4eb   : > { %3875 = vpow2.f32 %v1774_v27  ;;  %v1411_v35 = vcombine.low %v1104_v12, %v1406_v32  ;;  %v1412_v36 = vcombine.high %v1104_v12, %v1406_v32 }
 0x4ed   : > { %v1419_v41 = vrot.slane %v1411_v35, %v4817_v3  ;;  %v1426_v46 = vrot.slane %v1412_v36, %v4817_v3 }
 0x4f0   : > { %v4904_v28 = vpop.eup %3873 }
 0x4f1   : > { %v1782_v29 = vsel %vm1751_vm3, %v4904_v28, 0.0 }
 0x4f8   : > { %1402 = vrot.lane.b32.xlu0 %v1104_v12, %s4305_s14  ;;  %v4908_v30 = vpop.eup %3875 }
 0x4f9   : > { %v1785_v31 = vsel %vm1751_vm3, %v4908_v30, 0.0 }
 0x4fb   : > { %1408 = vrot.lane.b32.xlu1 %v1104_v12, %s4304_s4 }
 0x517   : > { %1783 = vadd.xlane.f32.xlu0 %v1782_v29 }
 0x51f   : > { %1786 = vadd.xlane.f32.xlu1 %v1785_v31 }
 0x56b   : > { %v1778_v33 = vpop.xlane.xlu0 %1777 }
 0x56c   : > { %3877 = vrcp.f32 %v1778_v33 }
 0x56f   : > { %v1403_v37 = vpop.permute.xlu0 %1402 }
 0x573   : > { %v1781_v34 = vpop.xlane.xlu1 %1780 }
 0x574   : > { %3879 = vrcp.f32 %v1781_v34 }
 0x577   : > { %v1409_v38 = vpop.permute.xlu1 %1408 }
 0x578   : > { %v1427_v39 = vcombine.low %v1403_v37, %v1409_v38  ;;  %v1428_v40 = vcombine.high %v1403_v37, %v1409_v38 }
 0x579   : > { %v3878_v8 = vpop.eup %3877 }
 0x57a   : > { %v1435_v47 = vrot.slane %v1427_v39, %v4817_v3  ;;  %v1442_v49 = vrot.slane %v1428_v40, %v4817_v3  ;;  %v1789_v22 = vmul.f32 %v3878_v8, %v4894_v19 }
 0x57c   : > { %v1443_v50 = vcombine.low %v1419_v41, %v1435_v47  ;;  %v1444_v52 = vcombine.high %v1419_v41, %v1435_v47  ;;  %v1459_v53 = vcombine.low %v1426_v46, %v1442_v49  ;;  %v1460_v54 = vcombine.high %v1426_v46, %v1442_v49  ;;  %v3779_v41 = vld [vmem:[%s4702_s26 + $0x38] sm:$0xff]   ;;  %v3781_v46 = vld [vmem:[%s4702_s26 + $0x28] sm:$0xff]   ;;  %v3782_v47 = vld [vmem:[%s4702_s26 + $0x20] sm:$0xff]  }
 0x57d   : > { %v1796_v31 = vpack.c.bf16 %v1789_v22, %v1789_v22  ;;  %v3784_v49 = vld [vmem:[%s4702_s26 + $0x10] sm:$0xff]  }
 0x57e   : > { %v1451_v55 = vrot.slane %v1443_v50, %v4820_v10  ;;  %v1458_v56 = vrot.slane %v1444_v52, %v4820_v10  ;;  %v1467_v42 = vrot.slane %v1459_v53, %v4820_v10  ;;  %v1474_v57 = vrot.slane %v1460_v54, %v4820_v10 }
 0x580   : > { %v1479_v58 = vcombine.low %v1451_v55, %v1458_v56  ;;  %v3325_v59 = vcombine.high %v1451_v55, %v1458_v56  ;;  %v1495_v60 = vcombine.low %v1467_v42, %v1474_v57  ;;  %v3326_v61 = vcombine.high %v1467_v42, %v1474_v57 }
 0x581   : > { %v3880_v15 = vpop.eup %3879 }
 0x582   : > { %v1486_v62 = vrot.slane %v1479_v58, %v4817_v3  ;;  %v1494_v63 = vrot.slane %v3325_v59, %v4817_v3  ;;  %v1502_v0 = vrot.slane %v1495_v60, %v4817_v3  ;;  %v1510_v1 = vrot.slane %v3326_v61, %v4817_v3 }
 0x583   : > { %v1791_v24 = vmul.f32 %v3880_v15, %v4898_v21 }
 0x584   : > { %v1511_v2 = vcombine.low %v1486_v62, %v1494_v63  ;;  %v1527_v5 = vcombine.low %v1502_v0, %v1510_v1  ;;  %v1512_v6 = vcombine.high %v1486_v62, %v1494_v63  ;;  %v1528_v7 = vcombine.high %v1502_v0, %v1510_v1 }
 0x585   : > { %v1797_v32 = vpack.c.bf16 %v1791_v24, %v1791_v24 }
 0x586   : > { %v1519_v11 = vrot.slane %v1511_v2, %v4820_v10  ;;  %v1535_v12 = vrot.slane %v1527_v5, %v4820_v10  ;;  %v1526_v13 = vrot.slane %v1512_v6, %v4820_v10  ;;  %v1542_v14 = vrot.slane %v1528_v7, %v4820_v10 }
 0x588   : > { %v1543_v16 = vcombine.low %v1519_v11, %v1535_v12  ;;  %v1544_v17 = vcombine.high %v1519_v11, %v1535_v12  ;;  %v1545_v18 = vcombine.low %v1526_v13, %v1542_v14  ;;  %v1546_v20 = vcombine.high %v1526_v13, %v1542_v14 }
 0x58a   : > { %v1800_v45 = vpack.c.bf16 %v1543_v16, %v1543_v16  ;;  %v1801_v48 = vpack.c.bf16 %v1544_v17, %v1544_v17  ;;  %v1802_v27 = vpack.c.bf16 %v1545_v18, %v1545_v18  ;;  %v1803_v29 = vpack.c.bf16 %v1546_v20, %v1546_v20  ;;  %v3785_v17 = vld [vmem:[%s4702_s26 + $0x8] sm:$0xff]  }
 0x58c   : > { %v1809_v25 = vsel %vm1807_vm4, %v1800_v45, 0  ;;  %v1855_v26 = vsel %vm1807_vm4, %v1801_v48, 0  ;;  %v1901_v19 = vsel %vm1807_vm4, %v1802_v27, 0  ;;  %v1947_v21 = vsel %vm1807_vm4, %v1803_v29, 0  ;;  %v3786_v29 = vld [vmem:[%s4702_s26] sm:$0xff]  }
 0x58d   : > { %3544 = vmatpush3.bf16.msra.mxu0 %v1809_v25  ;;  %3550 = vmatpush3.bf16.msra.mxu1 %v1855_v26 }
 0x58e   : > { %3555 = vmatprep.subr.bf16.mxu0 %v4301_v4  ;;  %3561 = vmatprep.subr.bf16.mxu1 %v4301_v4 }
 0x590   : > { %3546 = vmatmul.mubr.msk.bf16.vlgmr.msra.gmra.mxu0 %vm1751_vm3, %v1796_v31  ;;  %3552 = vmatmul.mubr.msk.bf16.vlgmr.msra.gmra.mxu1 %vm1751_vm3, %v1797_v32 }
 0x591   : > { %3556 = vmatpush3.bf16.msra.mxu0 %v1901_v19  ;;  %3562 = vmatpush3.bf16.msra.mxu1 %v1947_v21 }
 0x592   : > { %3557 = vmatprep.mubr.msk.bf16.mxu0 %vm4303_vm0, %v4301_v4  ;;  %3563 = vmatprep.mubr.msk.bf16.mxu1 %vm4303_vm0, %v4301_v4 }
 0x593   : > { %3567 = vmatprep.subr.bf16.mxu0 %v4301_v4 }
 0x5a0   : > { %v1784_v33 = vpop.xlane.xlu0 %1783 }
 0x5a1   : > { %3881 = vrcp.f32 %v1784_v33 }
 0x5a8   : > { %v1787_v34 = vpop.xlane.xlu1 %1786 }
 0x5a9   : > { %3883 = vrcp.f32 %v1787_v34 }
 0x5ae   : > { %v3882_v35 = vpop.eup %3881 }
 0x5af   : > { %v1793_v36 = vmul.f32 %v3882_v35, %v4904_v28  ;;  %v3780_v28 = vld [vmem:[%s4702_s26 + $0x30] sm:$0xff]  }
 0x5b1   : > { %v1798_v37 = vpack.c.bf16 %v1793_v36, %v1793_v36 }
 0x5b3   : > { %3558 = vmatmul.mubr.msk.bf16.vlgmr.msra.gmra.mxu0 %vm1751_vm3, %v1798_v37 }
 0x5b4   : > { %3583 = vmatprep.mubr.msk.bf16.mxu0 %vm4303_vm0, %v4301_v4  ;;  %3568 = vmatpush3.bf16.msra.mxu0 %v3779_v41 }
 0x5b5   : > { %3569 = vmatprep.subr.bf16.mxu0 %v4301_v4 }
 0x5b6   : > { %v3884_v38 = vpop.eup %3883 }
 0x5b7   : > { %v1795_v39 = vmul.f32 %v3884_v38, %v4908_v30  ;;  %v3783_v30 = vld [vmem:[%s4702_s26 + $0x18] sm:$0xff]  }
 0x5b8   : > { %3570 = vmatpush3.bf16.msra.mxu0 %v3780_v28 }
 0x5b9   : > { %v1799_v40 = vpack.c.bf16 %v1795_v39, %v1795_v39  ;;  %3571 = vmatprep.subr.bf16.mxu0 %v4301_v4 }
 0x5bb   : > { %3564 = vmatmul.mubr.msk.bf16.vlgmr.msra.gmra.mxu1 %vm1751_vm3, %v1799_v40 }
 0x5bc   : > { %2529 = vmatprep.mubr.bf16.mxu1 %v4302_v23  ;;  %3572 = vmatpush3.bf16.msra.mxu0 %v3781_v46 }
 0x5bd   : > { %3573 = vmatprep.subr.bf16.mxu0 %v4301_v4 }
 0x5c0   : > { %3574 = vmatpush3.bf16.msra.mxu0 %v3782_v47 }
 0x5c1   : > { %3575 = vmatprep.subr.bf16.mxu0 %v4301_v4 }
 0x5c4   : > { %3576 = vmatpush3.bf16.msra.mxu0 %v3783_v30 }
 0x5c5   : > { %3577 = vmatprep.subr.bf16.mxu0 %v4301_v4 }
 0x5c8   : > { %3578 = vmatpush3.bf16.msra.mxu0 %v3784_v49 }
 0x5c9   : > { %3579 = vmatprep.subr.bf16.mxu0 %v4301_v4 }
 0x5cc   : > { %3580 = vmatpush3.bf16.msra.mxu0 %v3785_v17  ;;  %v3808_v17 = vld [vmem:[%s4711_s22 + $0x88] ss:$16 sps:$4 sm:$0xff]  }
 0x5cd   : > { %3581 = vmatprep.subr.bf16.mxu0 %v4301_v4 }
 0x5d0   : > { %3582 = vmatpush3.bf16.msra.mxu0 %v3786_v29  ;;  %v3825_v29 = vld [vmem:[%s4711_s22 + $0x24] ss:$16 sps:$4 sm:$0xff]  }
 0x650   : > { %v1845_v50 = vpop.f32.mrf.mxu0  ;;  %v1891_v52 = vpop.f32.mrf.mxu1 }
 0x652   : > { %v3547_v53 = vpop.f32.mrf.mxu0  ;;  %v3553_v54 = vpop.f32.mrf.mxu1 }
 0x653   : > { %v3337_v53 = vld [vmem:[%s806_s13] ss:$0 sm:$0xff] }
 0x654   : > { %v1848_v55 = vpop.f32.mrf.mxu0  ;;  %v1894_v56 = vpop.f32.mrf.mxu1 }
 0x656   : > { %v3548_v42 = vpop.f32.mrf.mxu0  ;;  %v3554_v57 = vpop.f32.mrf.mxu1 }
 0x657   : > { %v3895_v42 = vld [vmem:[#allocation2] sm:$0xff] }
 0x673   : > { %v1937_v58 = vpop.f32.mrf.mxu0 }
 0x674   : > { %v1989_v62 = vcombine.low %v1845_v50, %v1937_v58  ;;  %v1990_v63 = vcombine.high %v1845_v50, %v1937_v58 }
 0x675   : > { %v3559_v59 = vpop.f32.mrf.mxu0 }
 0x676   : > { %v1997_v6 = vrot.slane %v1989_v62, %v4817_v3  ;;  %v2004_v7 = vrot.slane %v1990_v63, %v4817_v3  ;;  %v3792_v62 = vld [vmem:[%s4711_s22 + $0xec] ss:$16 sps:$4 sm:$0xff]   ;;  %v3795_v63 = vld [vmem:[%s4711_s22 + $0xc4] ss:$16 sps:$4 sm:$0xff]  }
 0x677   : > { %v1940_v60 = vpop.f32.mrf.mxu0  ;;  %2538 = vmatprep.subr.bf16.mxu0 %v3792_v62  ;;  %v3851_v62 = vld [vmem:[%s4741_s16 + $0x58] sm:$0xff]  }
 0x678   : > { %v3787_v60 = vld [vmem:[%s4711_s22 + $0xe0] ss:$16 sps:$4 sm:$0xff]  }
 0x679   : > { %v3560_v61 = vpop.f32.mrf.mxu0 }
 0x67a   : > { %v3790_v61 = vld [vmem:[%s4711_s22 + $0xe8] ss:$16 sps:$4 sm:$0xff]  }
 0x67b   : > { %v1983_v0 = vpop.f32.mrf.mxu1 }
 0x67c   : > { %v2005_v1 = vcombine.low %v1891_v52, %v1983_v0  ;;  %v2006_v2 = vcombine.high %v1891_v52, %v1983_v0  ;;  %v3798_v0 = vld [vmem:[%s4711_s22 + $0xcc] ss:$16 sps:$4 sm:$0xff]  }
 0x67d   : > { %v3565_v5 = vpop.f32.mrf.mxu1 }
 0x67e   : > { %v2013_v8 = vrot.slane %v2005_v1, %v4817_v3  ;;  %v2020_v11 = vrot.slane %v2006_v2, %v4817_v3  ;;  %v3793_v1 = vld [vmem:[%s4711_s22 + $0xc0] ss:$16 sps:$4 sm:$0xff]   ;;  %v3796_v2 = vld [vmem:[%s4711_s22 + $0xc8] ss:$16 sps:$4 sm:$0xff]  }
 0x67f   : > { %v1986_v12 = vpop.f32.mrf.mxu1 }
 0x680   : > { %v2021_v13 = vcombine.low %v1997_v6, %v2013_v8  ;;  %v2022_v14 = vcombine.high %v1997_v6, %v2013_v8  ;;  %v2037_v15 = vcombine.low %v2004_v7, %v2020_v11  ;;  %v2038_v16 = vcombine.high %v2004_v7, %v2020_v11  ;;  %v3801_v11 = vld [vmem:[%s4711_s22 + $0xa4] ss:$16 sps:$4 sm:$0xff]   ;;  %v3804_v12 = vld [vmem:[%s4711_s22 + $0xac] ss:$16 sps:$4 sm:$0xff]  }
 0x681   : > { %v3566_v18 = vpop.f32.mrf.mxu1 }
 0x682   : > { %v2029_v20 = vrot.slane %v2021_v13, %v4820_v10  ;;  %v2036_v45 = vrot.slane %v2022_v14, %v4820_v10  ;;  %v2045_v48 = vrot.slane %v2037_v15, %v4820_v10  ;;  %v2052_v22 = vrot.slane %v2038_v16, %v4820_v10  ;;  %v3799_v13 = vld [vmem:[%s4711_s22 + $0xa0] ss:$16 sps:$4 sm:$0xff]   ;;  %v3802_v14 = vld [vmem:[%s4711_s22 + $0xa8] ss:$16 sps:$4 sm:$0xff]   ;;  %v3807_v16 = vld [vmem:[%s4711_s22 + $0x84] ss:$16 sps:$4 sm:$0xff]  }
 0x683   : > { %v3805_v15 = vld [vmem:[%s4711_s22 + $0x80] ss:$16 sps:$4 sm:$0xff]   ;;  %v3810_v18 = vld [vmem:[%s4711_s22 + $0x8c] ss:$16 sps:$4 sm:$0xff]  }
 0x684   : > { %v2057_v24 = vcombine.low %v2029_v20, %v2036_v45  ;;  %v3335_v25 = vcombine.high %v2029_v20, %v2036_v45  ;;  %v2073_v26 = vcombine.low %v2045_v48, %v2052_v22  ;;  %v3336_v27 = vcombine.high %v2045_v48, %v2052_v22  ;;  %v3813_v20 = vld [vmem:[%s4711_s22 + $0x64] ss:$16 sps:$4 sm:$0xff]   ;;  %v3816_v45 = vld [vmem:[%s4711_s22 + $0x6c] ss:$16 sps:$4 sm:$0xff]   ;;  %v3811_v48 = vld [vmem:[%s4711_s22 + $0x60] ss:$16 sps:$4 sm:$0xff]  }
 0x685   : > { %v3814_v22 = vld [vmem:[%s4711_s22 + $0x68] ss:$16 sps:$4 sm:$0xff]  }
 0x686   : > { %v2064_v31 = vrot.slane %v2057_v24, %v4817_v3  ;;  %v2072_v32 = vrot.slane %v3335_v25, %v4817_v3  ;;  %v2080_v19 = vrot.slane %v2073_v26, %v4817_v3  ;;  %v2088_v21 = vrot.slane %v3336_v27, %v4817_v3  ;;  %v3819_v24 = vld [vmem:[%s4711_s22 + $0x44] ss:$16 sps:$4 sm:$0xff]   ;;  %v3822_v25 = vld [vmem:[%s4711_s22 + $0x4c] ss:$16 sps:$4 sm:$0xff]   ;;  %v3817_v26 = vld [vmem:[%s4711_s22 + $0x40] ss:$16 sps:$4 sm:$0xff]  }
 0x687   : > { %v3820_v27 = vld [vmem:[%s4711_s22 + $0x48] ss:$16 sps:$4 sm:$0xff]  }
 0x688   : > { %v2090_v33 = vcombine.high %v2064_v31, %v2072_v32  ;;  %v2106_v34 = vcombine.high %v2080_v19, %v2088_v21  ;;  %v2089_v35 = vcombine.low %v2064_v31, %v2072_v32  ;;  %v2105_v36 = vcombine.low %v2080_v19, %v2088_v21  ;;  %v3828_v31 = vld [vmem:[%s4711_s22 + $0x2c] ss:$16 sps:$4 sm:$0xff]   ;;  %v3823_v32 = vld [vmem:[%s4711_s22 + $0x20] ss:$16 sps:$4 sm:$0xff]   ;;  %v3826_v19 = vld [vmem:[%s4711_s22 + $0x28] ss:$16 sps:$4 sm:$0xff]  }
 0x689   : > { %v3831_v21 = vld [vmem:[%s4711_s22 + $0x4] ss:$16 sps:$4 sm:$0xff]  }
 0x68a   : > { %v2104_v4 = vrot.slane %v2090_v33, %v4820_v10  ;;  %v2120_v37 = vrot.slane %v2106_v34, %v4820_v10  ;;  %v2097_v38 = vrot.slane %v2089_v35, %v4820_v10  ;;  %v2113_v39 = vrot.slane %v2105_v36, %v4820_v10  ;;  %v3834_v33 = vld [vmem:[%s4711_s22 + $0xc] ss:$16 sps:$4 sm:$0xff]   ;;  %v3829_v34 = vld [vmem:[%s4711_s22] ss:$16 sps:$4 sm:$0xff]   ;;  %v3832_v35 = vld [vmem:[%s4711_s22 + $0x8] ss:$16 sps:$4 sm:$0xff]  }
 0x68c   : > { %v2123_v40 = vcombine.low %v2104_v4, %v2120_v37  ;;  %v2122_v41 = vcombine.high %v2097_v38, %v2113_v39  ;;  %v2121_v28 = vcombine.low %v2097_v38, %v2113_v39  ;;  %v2124_v3 = vcombine.high %v2104_v4, %v2120_v37  ;;  %v3346_v39 = vld [vmem:[%s5238_s17] ss:$0 sm:$0xff] }
 0x68e   : > { %2130 = vrot.lane.b32.xlu1 %v2123_v40, %s4306_s0  ;;  %2126 = vrot.lane.b32.xlu0 %v2122_v41, %s4304_s4  ;;  %v3347_v41 = vld [vmem:[%s5239_s20] ss:$0 sm:$0xff] }
 0x692   : > { %2134 = vrot.lane.b32.xlu0 %v2124_v3, %s4305_s14 }
 0x700   : > { %v2127_v46 = vpop.permute.xlu0 %2126  ;;  %v2131_v47 = vpop.permute.xlu1 %2130 }
 0x701   : > { %v2137_v30 = vsel %vm1555_vm1, %v2121_v28, %v2127_v46 }
 0x702   : > { %v2139_v10 = vsel %vm2138_vm5, %v2137_v30, %v2131_v47  ;;  %v3835_v47 = vld [vmem:[%s4741_s16 + $0x78] sm:$0xff]  }
 0x703   : > { %v3836_v30 = vld [vmem:[%s4741_s16 + $0xf8] sm:$0xff]  }
 0x704   : > { %v2135_v49 = vpop.permute.xlu0 %2134 }
 0x705   : > { %v2141_v50 = vsel %vm2140_vm6, %v2139_v10, %v2135_v49  ;;  %v3837_v49 = vld [vmem:[%s4741_s16 + $0x38] sm:$0xff]  }
 0x706   : > { %v2142_v52 = vpack.c.bf16 %v2141_v50, %v2141_v50  ;;  %v3838_v10 = vld [vmem:[%s4741_s16 + $0xb8] sm:$0xff]   ;;  %v3839_v50 = vld [vmem:[%s4741_s16 + $0x70] sm:$0xff]  }
 0x708   : > { %3584 = vmatmul.mubr.bf16.vlgmr.msra.gmra.mxu0 %v2142_v52  ;;  %v3840_v52 = vld [vmem:[%s4741_s16 + $0xf0] sm:$0xff]  }
 0x709   : > { %2570 = vmatprep.mubr.bf16.mxu0 %v4302_v23  ;;  %v3789_v23 = vld [vmem:[%s4711_s22 + $0xe4] ss:$16 sps:$4 sm:$0xff]   ;;  %2539 = vmatpush1.bf16.msra.mxu0 %v3790_v61  ;;  %s5241_s22 = sld [smem:[#allocation30_spill]] }
 0x70a   : > { %2497 = vmatprep.subr.bf16.mxu1 %v3789_v23  ;;  %2540 = vmatprep.subr.bf16.mxu0 %v3798_v0  ;;  %v3849_v23 = vld [vmem:[%s4741_s16 + $0x20] sm:$0xff]   ;;  %v3853_v0 = vld [vmem:[%s4741_s16 + $0x18] sm:$0xff]  }
 0x70b   : > { %2498 = vmatpush1.bf16.msra.mxu1 %v3787_v60  ;;  %v3848_v60 = vld [vmem:[%s4741_s16 + $0xe0] sm:$0xff]  }
 0x70c   : > { %2499 = vmatprep.subr.bf16.mxu1 %v3795_v63  ;;  %v3850_v61 = vld [vmem:[%s4741_s16 + $0xa0] sm:$0xff]   ;;  %v3852_v63 = vld [vmem:[%s4741_s16 + $0xd8] sm:$0xff]  }
 0x70d   : > { %2541 = vmatpush1.bf16.msra.mxu0 %v3796_v2  ;;  %v3855_v2 = vld [vmem:[%s4741_s16 + $0x50] sm:$0xff]  }
 0x70e   : > { %2542 = vmatprep.subr.bf16.mxu0 %v3804_v12  ;;  %v3861_v12 = vld [vmem:[%s4741_s16 + $0x8] sm:$0xff]  }
 0x70f   : > { %2500 = vmatpush1.bf16.msra.mxu1 %v3793_v1  ;;  %v3854_v1 = vld [vmem:[%s4741_s16 + $0x98] sm:$0xff]   ;;  %p3413_p3 = scmp.ne.s32.totalorder %s5241_s22, 1 }
 0x710   : > { %2501 = vmatprep.subr.bf16.mxu1 %v3801_v11  ;;  %v3860_v11 = vld [vmem:[%s4741_s16 + $0xc8] sm:$0xff]  }
 0x711   : > { %2543 = vmatpush1.bf16.msra.mxu0 %v3802_v14  ;;  %v3863_v14 = vld [vmem:[%s4741_s16 + $0x40] sm:$0xff]  }
 0x712   : > { %2544 = vmatprep.subr.bf16.mxu0 %v3810_v18  ;;  %v2315_v18 = vld [vmem:[%s4739_s2] sm:$0xf] }
 0x713   : > { %2502 = vmatpush1.bf16.msra.mxu1 %v3799_v13  ;;  %v3862_v13 = vld [vmem:[%s4741_s16 + $0x88] sm:$0xff]  }
 0x714   : > { %2503 = vmatprep.subr.bf16.mxu1 %v3807_v16  ;;  %v3865_v16 = vld [vmem:[%s4741_s16] sm:$0xff]  }
 0x715   : > { %2545 = vmatpush1.bf16.msra.mxu0 %v3808_v17  ;;  %v3866_v17 = vld [vmem:[%s4741_s16 + $0x80] sm:$0xff]  }
 0x716   : > { %2546 = vmatprep.subr.bf16.mxu0 %v3816_v45  ;;  %v2320_v45 = vrot.slane %v2315_v18, %v887_v51 }
 0x717   : > { %2504 = vmatpush1.bf16.msra.mxu1 %v3805_v15  ;;  %v3864_v15 = vld [vmem:[%s4741_s16 + $0xc0] sm:$0xff]  }
 0x718   : > { %2505 = vmatprep.subr.bf16.mxu1 %v3813_v20  ;;  %v2331_v20 = vsub.s32 3, %v4795_v43 }
 0x719   : > { %2547 = vmatpush1.bf16.msra.mxu0 %v3814_v22  ;;  %v2324_v22 = vrot.slane %v2315_v18, %v891_v44 }
 0x71a   : > { %2548 = vmatprep.subr.bf16.mxu0 %v3822_v25 }
 0x71b   : > { %2506 = vmatpush1.bf16.msra.mxu1 %v3811_v48  ;;  %v2328_v48 = vrot.slane %v2315_v18, %v895_v9 }
 0x71c   : > { %2507 = vmatprep.subr.bf16.mxu1 %v3819_v24  ;;  %v2332_v24 = vrot.slane %v2315_v18, %v2331_v20 }
 0x71d   : > { %2549 = vmatpush1.bf16.msra.mxu0 %v3820_v27 }
 0x71e   : > { %2550 = vmatprep.subr.bf16.mxu0 %v3828_v31 }
 0x71f   : > { %2508 = vmatpush1.bf16.msra.mxu1 %v3817_v26 }
 0x720   : > { %2509 = vmatprep.subr.bf16.mxu1 %v3825_v29 }
 0x721   : > { %2551 = vmatpush1.bf16.msra.mxu0 %v3826_v19 }
 0x722   : > { %2552 = vmatprep.subr.bf16.mxu0 %v3834_v33 }
 0x723   : > { %2510 = vmatpush1.bf16.msra.mxu1 %v3823_v32 }
 0x724   : > { %2511 = vmatprep.subr.bf16.mxu1 %v3831_v21 }
 0x725   : > { %2553 = vmatpush1.bf16.msra.mxu0 %v3832_v35 }
 0x726   : > { %3477 = vmatprep.subr.bf16.mxu0 %v3836_v30 }
 0x727   : > { %2512 = vmatpush1.bf16.msra.mxu1 %v3829_v34 }
 0x728   : > { %3455 = vmatprep.subr.bf16.mxu1 %v3835_v47 }
 0x7c8   : > { %v2248_v54 = vpop.f32.mrf.mxu0 }
 0x7c9   : > { %v2249_v55 = vadd.f32 %v3337_v53, %v2248_v54  ;;  %v3841_v53 = vld [vmem:[%s4741_s16 + $0x30] sm:$0xff]  }
 0x7ca   : > { %v3585_v56 = vpop.f32.mrf.mxu0  ;;  %v3842_v54 = vld [vmem:[%s4741_s16 + $0xb0] sm:$0xff]  }
 0x7cb   : > { %v4991_v57 = vadd.f32 %v3895_v42, %v2249_v55  ;;  %v3843_v55 = vld [vmem:[%s4741_s16 + $0x68] sm:$0xff]  }
 0x7cc   : > { %v2251_v58 = vpop.f32.mrf.mxu0  ;;  %v3844_v56 = vld [vmem:[%s4741_s16 + $0xe8] sm:$0xff]  }
 0x7cd   : > { %2257 = vadd.xlane.f32.xlu1 %v4991_v57  ;;  %v3845_v42 = vld [vmem:[%s4741_s16 + $0x28] sm:$0xff]  }
 0x7ce   : > { %v3586_v59 = vpop.f32.mrf.mxu0  ;;  %v3846_v58 = vld [vmem:[%s4741_s16 + $0xa8] sm:$0xff]  }
 0x7cf   : > { %v3847_v59 = vld [vmem:[%s4741_s16 + $0x60] sm:$0xff]  }
 0x856   : > { %v2258_v5 = vpop.xlane.xlu1 %2257 }
 0x857   : > { %v2259_v6 = vmul.f32 0.0078125, %v2258_v5  ;;  %v3856_v5 = vld [vmem:[%s4741_s16 + $0xd0] sm:$0xff]  }
 0x859   : > { %v2260_v7 = vsub.f32 %v4991_v57, %v2259_v6  ;;  %v3857_v6 = vld [vmem:[%s4741_s16 + $0x10] sm:$0xff]  }
 0x85b   : > { %v2261_v8 = vmul.f32 %v2260_v7, %v2260_v7 }
 0x85d   : > { %2262 = vadd.xlane.f32.xlu0 %v2261_v8  ;;  %v3859_v8 = vld [vmem:[%s4741_s16 + $0x48] sm:$0xff]  }
 0x8e6   : > { %v2263_v36 = vpop.xlane.xlu0 %2262 }
 0x8e7   : > { %v2264_v4 = vmul.f32 0.0078125, %v2263_v36 }
 0x8e9   : > { %v2265_v37 = vadd.f32 1e-05, %v2264_v4 }
 0x8eb   : > { %3885 = vrsqrt.f32 %v2265_v37 }
 0x8f8   : > { %v3886_v38 = vpop.eup %3885 }
 0x8f9   : > { %v2267_v40 = vmul.f32 %v3886_v38, %v2260_v7  ;;  %v3858_v7 = vld [vmem:[%s4741_s16 + $0x90] sm:$0xff]  }
 0x8fb   : > { %v2274_v28 = vmul.f32 %v3346_v39, %v2267_v40 }
 0x8fd   : > { %v2281_v3 = vadd.f32 %v3347_v41, %v2274_v28 }
 0x8ff   : > { %v2282_v46 = vpack.c.bf16 %v2281_v3, %v2281_v3 }
 0x901   : > { %2530 = vmatmul.mubr.bf16.vlgmr.msra.gmra.mxu1 %v2282_v46  ;;  %2571 = vmatmul.mubr.bf16.vlgmr.msra.gmra.mxu0 %v2282_v46 }
 0x902   : > { %3456 = vmatpush3.bf16.msra.mxu1 %v3837_v49  ;;  %3478 = vmatpush3.bf16.msra.mxu0 %v3838_v10 }
 0x903   : > { %3457 = vmatprep.subr.bf16.mxu1 %v3839_v50  ;;  %3479 = vmatprep.subr.bf16.mxu0 %v3840_v52 }
 0x906   : > { %3458 = vmatpush3.bf16.msra.mxu1 %v3841_v53  ;;  %3480 = vmatpush3.bf16.msra.mxu0 %v3842_v54 }
 0x907   : > { %3459 = vmatprep.subr.bf16.mxu1 %v3843_v55  ;;  %3481 = vmatprep.subr.bf16.mxu0 %v3844_v56 }
 0x90a   : > { %3460 = vmatpush3.bf16.msra.mxu1 %v3845_v42  ;;  %3482 = vmatpush3.bf16.msra.mxu0 %v3846_v58 }
 0x90b   : > { %3461 = vmatprep.subr.bf16.mxu1 %v3847_v59  ;;  %3483 = vmatprep.subr.bf16.mxu0 %v3848_v60 }
 0x90e   : > { %3462 = vmatpush3.bf16.msra.mxu1 %v3849_v23  ;;  %3484 = vmatpush3.bf16.msra.mxu0 %v3850_v61 }
 0x90f   : > { %3463 = vmatprep.subr.bf16.mxu1 %v3851_v62  ;;  %3485 = vmatprep.subr.bf16.mxu0 %v3852_v63 }
 0x912   : > { %3464 = vmatpush3.bf16.msra.mxu1 %v3853_v0  ;;  %3486 = vmatpush3.bf16.msra.mxu0 %v3854_v1 }
 0x913   : > { %3465 = vmatprep.subr.bf16.mxu1 %v3855_v2  ;;  %3487 = vmatprep.subr.bf16.mxu0 %v3856_v5 }
 0x916   : > { %3466 = vmatpush3.bf16.msra.mxu1 %v3857_v6  ;;  %3488 = vmatpush3.bf16.msra.mxu0 %v3858_v7 }
 0x917   : > { %3467 = vmatprep.subr.bf16.mxu1 %v3859_v8  ;;  %3489 = vmatprep.subr.bf16.mxu0 %v3860_v11 }
 0x91a   : > { %3468 = vmatpush3.bf16.msra.mxu1 %v3861_v12  ;;  %3490 = vmatpush3.bf16.msra.mxu0 %v3862_v13 }
 0x91b   : > { %3469 = vmatprep.subr.bf16.mxu1 %v3863_v14  ;;  %3491 = vmatprep.subr.bf16.mxu0 %v3864_v15 }
 0x91e   : > { %3470 = vmatpush3.bf16.msra.mxu1 %v3865_v16  ;;  %3492 = vmatpush3.bf16.msra.mxu0 %v3866_v17 }
 0x9c1   : > { %v2531_v25 = vpop.f32.mrf.mxu1  ;;  %v2572_v26 = vpop.f32.mrf.mxu0 }
 0x9c2   : > { %v2532_v27 = vadd.f32 %v2531_v25, %v2320_v45  ;;  %v2573_v29 = vadd.f32 %v2572_v26, %v2328_v48 }
 0x9c3   : > { %v2533_v31 = vpop.f32.mrf.mxu1  ;;  %v2574_v32 = vpop.f32.mrf.mxu0 }
 0x9c4   : > { %v2579_v19 = vmul.f32 %v2532_v27, %v2532_v27  ;;  %v2581_v21 = vmul.f32 %v2573_v29, %v2573_v29  ;;  %v2534_v33 = vadd.f32 %v2533_v31, %v2324_v22  ;;  %v2575_v34 = vadd.f32 %v2574_v32, %v2332_v24  ;;  %v3412_v24 = vld [vmem:[%s813_s24] ss:$0 sm:$0xff] }
 0x9c5   : > { %v2535_v35 = vpop.f32.mrf.mxu1  ;;  %v2576_v36 = vpop.f32.mrf.mxu0 }
 0x9c6   : > { %v2583_v51 = vmul.f32 %v2579_v19, %v2532_v27  ;;  %v2585_v4 = vmul.f32 %v2581_v21, %v2573_v29  ;;  %v2580_v37 = vmul.f32 %v2534_v33, %v2534_v33  ;;  %v2582_v9 = vmul.f32 %v2575_v34, %v2575_v34 }
 0x9c7   : > { %v2536_v38 = vpop.f32.mrf.mxu1  ;;  %v2577_v43 = vpop.f32.mrf.mxu0 }
 0x9c8   : > { %v2587_v44 = vmul.f32 0.044715, %v2583_v51  ;;  %v2589_v39 = vmul.f32 0.044715, %v2585_v4  ;;  %v2584_v40 = vmul.f32 %v2580_v37, %v2534_v33  ;;  %v2586_v41 = vmul.f32 %v2582_v9, %v2575_v34 }
 0x9ca   : > { %v2591_v28 = vadd.f32 %v2587_v44, %v2532_v27  ;;  %v2593_v3 = vadd.f32 %v2589_v39, %v2573_v29  ;;  %v2588_v46 = vmul.f32 0.044715, %v2584_v40  ;;  %v2590_v47 = vmul.f32 0.044715, %v2586_v41 }
 0x9cc   : > { %v2595_v30 = vmul.f32 0.7978846, %v2591_v28  ;;  %v2597_v49 = vmul.f32 0.7978846, %v2593_v3  ;;  %v2592_v10 = vadd.f32 %v2588_v46, %v2534_v33  ;;  %v2594_v50 = vadd.f32 %v2590_v47, %v2575_v34 }
 0x9ce   : > { %3887 = vtanh.f32 %v2595_v30  ;;  %v2596_v52 = vmul.f32 0.7978846, %v2592_v10  ;;  %v2598_v53 = vmul.f32 0.7978846, %v2594_v50 }
 0x9cf   : > { %3889 = vtanh.f32 %v2597_v49 }
 0x9d0   : > { %3891 = vtanh.f32 %v2596_v52 }
 0x9d1   : > { %3893 = vtanh.f32 %v2598_v53 }
 0x9db   : > { %v3888_v54 = vpop.eup %3887 }
 0x9dc   : > { %v3890_v55 = vpop.eup %3889  ;;  %v2603_v56 = vadd.f32 1.0, %v3888_v54 }
 0x9dd   : > { %v3892_v42 = vpop.eup %3891  ;;  %v2605_v58 = vadd.f32 1.0, %v3890_v55 }
 0x9de   : > { %v3894_v59 = vpop.eup %3893  ;;  %v2604_v60 = vadd.f32 1.0, %v3892_v42  ;;  %v2607_v23 = vmul.f32 0.5, %v2603_v56 }
 0x9df   : > { %v2606_v61 = vadd.f32 1.0, %v3894_v59  ;;  %v2609_v62 = vmul.f32 0.5, %v2605_v58 }
 0x9e0   : > { %v2608_v63 = vmul.f32 0.5, %v2604_v60  ;;  %v2611_v1 = vmul.f32 %v2607_v23, %v2532_v27 }
 0x9e1   : > { %v2610_v0 = vmul.f32 0.5, %v2606_v61  ;;  %v2613_v5 = vmul.f32 %v2609_v62, %v2573_v29 }
 0x9e2   : > { %v2612_v2 = vmul.f32 %v2608_v63, %v2534_v33  ;;  %v2615_v11 = vpack.c.bf16 %v2611_v1, %v2611_v1 }
 0x9e3   : > { %v2614_v6 = vmul.f32 %v2610_v0, %v2575_v34  ;;  %v2617_v12 = vpack.c.bf16 %v2613_v5, %v2613_v5 }
 0x9e4   : > { %v2616_v7 = vpack.c.bf16 %v2612_v2, %v2612_v2 }
 0x9e5   : > { %v2618_v8 = vpack.c.bf16 %v2614_v6, %v2614_v6 }
 0x9e6   : > { %2907 = vmatprep.mubr.bf16.mxu1 %v2616_v7 }
 0x9e7   : > { %2947 = vmatprep.mubr.bf16.mxu0 %v2618_v8  ;;  %2908 = vmatmul.mubr.bf16.vlgmr.msra.gmra.mxu1 %v2615_v11 }
 0x9e8   : > { %2948 = vmatmul.mubr.bf16.vlgmr.msra.gmra.mxu0 %v2617_v12 }
 0xaa7   : > { %v3471_v13 = vpop.f32.mrf.mxu1 }
 0xaa8   : > { %v3493_v14 = vpop.f32.mrf.mxu0 }
 0xaa9   : > { %v3472_v15 = vpop.f32.mrf.mxu1 }
 0xaaa   : > { %v3473_v16 = vadd.f32 %v3472_v15, %v3471_v13  ;;  %v3494_v17 = vpop.f32.mrf.mxu0 }
 0xaab   : > { %v3495_v18 = vadd.f32 %v3494_v17, %v3493_v14  ;;  %v3474_v20 = vpop.f32.mrf.mxu1 }
 0xaac   : > { %v3496_v45 = vpop.f32.mrf.mxu0 }
 0xaad   : > { %v2950_v48 = vadd.f32 %v3495_v18, %v3473_v16  ;;  %v3475_v22 = vpop.f32.mrf.mxu1 }
 0xaae   : > { %v3497_v25 = vpop.f32.mrf.mxu0 }
 0xaaf   : > { %v2955_v26 = vadd.f32 %v2950_v48, %v4991_v57  ;;  %2968 = sbr.rel (%p3413_p3) target bundleno = 2741 (0xab5), region = 116 }
 0xab1   : > { %v2963_v27 = vadd.f32 %v3412_v24, %v2955_v26 }
 0xab3   : > { %2964 = vst [vmem:[#allocation2] sm:$0xff] %v2963_v27 }
 0xab4   : > { %2969 = vst [vmem:[%s4745_s12] sm:$0xff] %v2963_v27 }
 0xab5 PF: > { %s5242_s9 = sld [smem:[#allocation31_spill]]  ;;  %s2984_s11 = sshll.u32 %s4745_s12, 4  ;;  %s2985_s11 = int_to_ptr.vmem [resolvable:$true] %s2984_s11 }
 0xab6   : > { %s5243_s25 = sld [smem:[#allocation53_spill]]  ;;  %s2971_s8 = scalar_lea.sflag [#allocation5], %s4672_s7 }
 0xab7   : > { %s4148_s1 = scalar_lea.vmem %s2985_s11, 128  ;;  %s4309_s24 = smov [#allocation18]  }
 0xab8   : > { %p4149_p0 = scmp.ne.s32.totalorder %s2985_s11, %s4148_s1  ;;  %s4152_s28 = sshll.u32 %s4309_s24, 4  ;;  %s4153_s28 = int_to_ptr.vmem [resolvable:$false] %s4152_s28 }
 0xab9   : > { %s4154_s21 = scalar_lea.vmem %s4153_s28, 256  ;;  %p4155_p5 = scmp.lt.s32.totalorder %s2985_s11, %s4153_s28 }
 0xaba   : > { %p4150_p10 = pnand %p4149_p0, %p4582_p1  ;;  %p4156_p12 = scmp.lt.s32.totalorder %s4154_s21, %s4148_s1 }
 0xabb   : > { %s3415_s6 = sshll.u32 %s5242_s9, 7 }
 0xabc   : > { %s5244_s13 = smov %s5243_s25  ;;  %s2982_s5 = scalar_lea.hbm %s5243_s25, %s3415_s6 }
 0xabd   : > { %p4151_p8 = pneg %p4150_p10  ;;  %p4157_p9 = por %p4156_p12, %p4155_p5 }
 0xabf   : > { %p4158_p6 = pnand %p4157_p9, %p4151_p8 }
 0xac1   : > { %4161 = shalt.err (!%p4158_p6)
}
 0xac2   : > { %s4162_s29 = scalar_lea.hbm %s2982_s5, 128  ;;  %s4166_s15 = scalar_lea.hbm %s5244_s13, 256 }
 0xac3   : > { %p4163_p13 = scmp.ne.s32.totalorder %s2982_s5, %s4162_s29  ;;  %p4167_p4 = scmp.lt.s32.totalorder %s2982_s5, %s5244_s13 }
 0xac4   : > { %p4168_p2 = scmp.lt.s32.totalorder %s4166_s15, %s4162_s29 }
 0xac5   : > { %p4164_p11 = pnand %p4163_p13, %p4582_p1 }
 0xac6   : > { %p4169_p3 = por %p4168_p2, %p4167_p4 }
 0xac7   : > { %p4165_p7 = pneg %p4164_p11 }
 0xac9   : > { %p4170_p0 = pnand %p4169_p3, %p4165_p7 }
 0xacb   : > { %4173 = shalt.err (!%p4170_p0)
}
 0xacc   : > { %3609 = dma.vmem_to_hbm [thread:$0]  (%p4582_p1), %s2985_s11, 128, %s2982_s5, %s2971_s8  }
 0xacd PF: > { %s5245_s0 = sld [smem:[#allocation27_spill]]  ;;  %p3644_p10 = scmp.ge.s32.totalorder %s4284_s18, 2 }
 0xace   : > { %s5246_s27 = sld [smem:[#allocation39_spill]] }
 0xad3   : > { %s2996_s26 = sand.u32 1, %s5245_s0  }
 0xad4   : > { %p5247_p8 = scmp.ne.s32.totalorder %s5246_s27, 0  ;;  %s2997_s3 = scalar_lea.sflag [#allocation5], %s2996_s26 }
 0xad6   : > { %p3640_p5 = pnand %p3644_p10, %p5247_p8 }
 0xad8   : > { %p3641_p12 = pneg %p3640_p5 }
 0xada   : > { %4239 = dma.done.wait (%p3641_p12), %s2997_s3, 128  }
 0xadb   : > { %4241 = vsyncadd (%p3641_p12), %s2997_s3, 4294967168  ;;  %s41_s18 = sadd.s32 1, %s4284_s18   ;;  %s5248_s25 = sld [smem:[#allocation25_spill]] }
 0xadc   : > { %p38_p9 = scmp.ge.s32.totalorder %s41_s18, 6   ;;  %s5249_s26 = sld [smem:[#allocation26_spill]] }
 0xadd   : > { %s5250_s27 = sld [smem:[#allocation37_spill]] }
 0xade   : > { %s5251_s28 = sld [smem:[#allocation28_spill]] }
 0xadf   : > { %s5252_s29 = sld [smem:[#allocation29_spill]] }
 0xae0   : > { %s5253_s30 = sld [smem:[#allocation38_spill]]  ;;  %40 = sbr.rel (!%p38_p9) target bundleno = 32 (0x20), region = 233 }
 0xae1   : > { %s5254_s14 = sld [smem:[#allocation32_spill]] }
 0xae2   : > { %s5255_s15 = sld [smem:[#allocation33_spill]] }
 0xae3   : > { %s5256_s16 = sld [smem:[#allocation35_spill]] }
 0xae4   : > { %s5257_s17 = sld [smem:[#allocation36_spill]] }
 0xae5   :  { %3002 = vsyncpa [#allocation4], 1 }
 0xae6   :  { %3004 = vsyncpa [#allocation4 + $0x1], 1 }
 0xae7   :  { %3005 = vsyncpa [#allocation7], 1 }
 0xae8   :  { %3007 = vsyncpa [#allocation7 + $0x1], 1 }
 0xae9   :  { %3008 = vsyncpa [#allocation10], 1 }
 0xaea   :  { %3010 = vsyncpa [#allocation10 + $0x1], 1 }
 0xaeb   :  { %3011 = vsyncpa [#allocation13], 1 }
 0xaec   :  { %3013 = vsyncpa [#allocation13 + $0x1], 1 }
 0xaed   :  { %3014 = vsyncpa [#allocation16], 1 }
 0xaee   :  { %3016 = vsyncpa [#allocation16 + $0x1], 1 }
 0xaef   :  { %3017 = vsyncpa [#allocation5], 1 }
 0xaf0   :  { %3019 = vsyncpa [#allocation5 + $0x1], 1 }

</bundles_post_ra>
